<compile_context>
chip_gen: v6e
topology: v6e:2x2x1
jax: 0.10.0
libtpu: 0.0.40
codegen_flags: <defaults>
</compile_context>

<pallas_src>
import functools

import jax
import jax.numpy as jnp
from jax.experimental import pallas as pl
from jax.experimental.pallas import tpu as pltpu


# ----------------------------------------------------------------------------
# generation-aware sizing helpers
# ----------------------------------------------------------------------------
def _vmem_budget_and_target_rows():
    try:
        kind = jax.devices()[0].device_kind.lower()
    except Exception:
        kind = ""
    if "v7" in kind or "7x" in kind:           # v7x: 64 MiB VMEM per TensorCore
        return 56 * 1024 * 1024, 256
    if "v5" in kind or "v6" in kind:           # v5e / v6e: 128 MiB VMEM
        return 100 * 1024 * 1024, 512
    return 48 * 1024 * 1024, 256               # unknown generation: conservative


def _choose_batch_tile(B, S, D, F, emit_attn, weight_bytes, weight_buffers,
                       vmem_budget, target_rows):
    """Pick TB (sequences per grid step) from an explicit VMEM budget."""
    # rough per-sequence VMEM footprint: activation blocks, ctx scratch,
    # and the largest in-kernel f32 temporaries.
    per_seq = (S * D * 2 * (2 + 2)             # bf16 x / out blocks, double-buffered
               + S * D * 2                     # bf16 ctx scratch
               + S * 3 * D * 4                 # f32 qkv
               + S * F * 4                     # f32 FF intermediate
               + 3 * S * D * 4                 # f32 residual / LN temporaries
               + S * S * 4)                    # f32 per-head scores
    if emit_attn:
        per_seq += S * S * 4 * 3               # attn out block (2-buf) + attn_avg
    avail = vmem_budget - weight_buffers * weight_bytes - (4 << 20)
    tb_fit = max(1, avail // max(per_seq, 1))
    tb = int(min(B, tb_fit, max(1, target_rows // max(S, 1))))
    if B >= 2:
        tb = min(tb, B // 2)   # guarantee >=2 grid steps (dual-TC + pipelining)
    tb = max(tb, 1)
    while B % tb:
        tb -= 1
    return tb


# ----------------------------------------------------------------------------
# One post-norm transformer encoder layer (optionally fused with pos-encoding)
#   x   = x*sqrt(d_model) + pe           (first layer only)
#   a   = MHA(x);  x = LN1(x + a)
#   f   = W2 relu(W1 x);  out = LN2(x + f)
# ----------------------------------------------------------------------------
def encoder_layer_kernel(x_ref, pe_ref,
                         wqkv_ref, bqkv_ref, wo_ref, bo_ref,
                         g1_ref, be1_ref,
                         w1_ref, b1_ref, w2_ref, b2_ref,
                         g2_ref, be2_ref,
                         *out_and_scratch,
                         num_heads, apply_posenc, emb_scale, emit_attn):
    if emit_attn:
        o_ref, attn_ref, ctx_ref = out_and_scratch
    else:
        (o_ref, ctx_ref), attn_ref = out_and_scratch, None

    TB, S, D = x_ref.shape
    hd = D // num_heads
    M = TB * S

    x = x_ref[...].astype(jnp.float32)                       # (TB, S, D)
    if apply_posenc:
        # fused: embedding * sqrt(d_model) + positional encoding
        x = x * emb_scale + pe_ref[...][None, :, :]
    x2 = x.reshape(M, D)                                     # merged M dim

    # ---- fused QKV projection: one (M, D) x (D, 3D) bf16 matmul, f32 acc ---
    qkv = jnp.dot(x2.astype(jnp.bfloat16), wqkv_ref[...],
                  preferred_element_type=jnp.float32) + bqkv_ref[...]   # (M, 3D)

    inv_sqrt_hd = 1.0 / (float(hd) ** 0.5)
    attn_avg = jnp.zeros((TB, S, S), jnp.float32) if emit_attn else None

    # Static head loop; each head's context lands in its column block of the
    # (M, D) bf16 VMEM scratch so the output projection is a single K=D matmul.
    for h in range(num_heads):
        qh = (qkv[:, h * hd:(h + 1) * hd] * inv_sqrt_hd).reshape(TB, S, hd)
        kh = qkv[:, D + h * hd:D + (h + 1) * hd].reshape(TB, S, hd)
        vh = qkv[:, 2 * D + h * hd:2 * D + (h + 1) * hd].reshape(TB, S, hd)

        s = jnp.einsum('bqd,bkd->bqk',
                       qh.astype(jnp.bfloat16), kh.astype(jnp.bfloat16),
                       preferred_element_type=jnp.float32)   # (TB, S, S) f32
        s = s - jnp.max(s, axis=-1, keepdims=True)
        p = jnp.exp(s)
        p = p * pl.reciprocal(jnp.sum(p, axis=-1, keepdims=True), approx=True)
        if emit_attn:
            attn_avg = attn_avg + p

        ctx = jnp.einsum('bqk,bkd->bqd',
                         p.astype(jnp.bfloat16), vh.astype(jnp.bfloat16),
                         preferred_element_type=jnp.float32)  # (TB, S, hd)
        ctx_ref[:, h * hd:(h + 1) * hd] = ctx.reshape(M, hd).astype(ctx_ref.dtype)

    # ---- single output projection over all heads (contraction K = D) --------
    attn_out = jnp.dot(ctx_ref[...], wo_ref[...],
                       preferred_element_type=jnp.float32) + bo_ref[...]

    # ---- residual + LayerNorm 1 (f32) ---------------------------------------
    h1 = x2 + attn_out
    mu1 = jnp.mean(h1, axis=-1, keepdims=True)
    var1 = jnp.mean((h1 - mu1) ** 2, axis=-1, keepdims=True)
    h1n = (h1 - mu1) * jax.lax.rsqrt(var1 + 1e-5) * g1_ref[...] + be1_ref[...]

    # ---- feed-forward (bf16 matmuls, f32 accumulate, f32 relu) --------------
    f = jnp.dot(h1n.astype(jnp.bfloat16), w1_ref[...],
                preferred_element_type=jnp.float32) + b1_ref[...]
    f = jnp.maximum(f, 0.0)
    f = jnp.dot(f.astype(jnp.bfloat16), w2_ref[...],
                preferred_element_type=jnp.float32) + b2_ref[...]

    # ---- residual + LayerNorm 2 ---------------------------------------------
    h2 = h1n + f
    mu2 = jnp.mean(h2, axis=-1, keepdims=True)
    var2 = jnp.mean((h2 - mu2) ** 2, axis=-1, keepdims=True)
    out = (h2 - mu2) * jax.lax.rsqrt(var2 + 1e-5) * g2_ref[...] + be2_ref[...]

    o_ref[...] = out.reshape(TB, S, D).astype(o_ref.dtype)
    if emit_attn:
        # head-averaged attention probabilities (PyTorch MHA default semantics)
        attn_ref[...] = (attn_avg * (1.0 / num_heads)).astype(attn_ref.dtype)


def encoder_layer(x, pe, params, *, num_heads, apply_posenc, emb_scale,
                  batch_tile, emit_attn, vmem_limit):
    B, S, D = x.shape
    F = params["w1"].shape[1]
    TB = batch_tile
    assert B % TB == 0
    M = TB * S

    kern = functools.partial(encoder_layer_kernel, num_heads=num_heads,
                             apply_posenc=apply_posenc, emb_scale=emb_scale,
                             emit_attn=emit_attn)

    def data_spec(shape):
        return pl.BlockSpec(shape, lambda b: (b,) + (0,) * (len(shape) - 1))

    def run(single_buffer_weights):
        def const_spec(shape):
            zeros = (0,) * len(shape)
            idx = lambda b, _z=zeros: _z
            if single_buffer_weights:
                # constant block index -> no need to double-buffer the weights
                return pl.BlockSpec(shape, idx, pipeline_mode=pl.Buffered(1))
            return pl.BlockSpec(shape, idx)

        in_specs = [
            data_spec((TB, S, D)),                              # x
            const_spec((S, D)),                                 # pe
            const_spec((D, 3 * D)), const_spec((1, 3 * D)),     # wqkv, bqkv
            const_spec((D, D)), const_spec((1, D)),             # wo, bo
            const_spec((1, D)), const_spec((1, D)),             # ln1 g, b
            const_spec((D, F)), const_spec((1, F)),             # w1, b1
            const_spec((F, D)), const_spec((1, D)),             # w2, b2
            const_spec((1, D)), const_spec((1, D)),             # ln2 g, b
        ]
        if emit_attn:
            out_shape = (jax.ShapeDtypeStruct((B, S, D), jnp.bfloat16),
                         jax.ShapeDtypeStruct((B, S, S), jnp.float32))
            out_specs = (data_spec((TB, S, D)), data_spec((TB, S, S)))
        else:
            out_shape = jax.ShapeDtypeStruct((B, S, D), jnp.bfloat16)
            out_specs = data_spec((TB, S, D))

        return pl.pallas_call(
            kern,
            out_shape=out_shape,
            grid_spec=pltpu.PrefetchScalarGridSpec(
                num_scalar_prefetch=0,
                grid=(B // TB,),
                in_specs=in_specs,
                out_specs=out_specs,
                scratch_shapes=[pltpu.VMEM((M, D), jnp.bfloat16)],  # per-head ctx
            ),
            compiler_params=pltpu.CompilerParams(
                dimension_semantics=("parallel",),
                vmem_limit_bytes=int(vmem_limit),
            ),
        )(x, pe,
          params["wqkv"], params["bqkv"], params["wo"], params["bo"],
          params["ln1_g"], params["ln1_b"],
          params["w1"], params["b1"], params["w2"], params["b2"],
          params["ln2_g"], params["ln2_b"])

    if hasattr(pl, "Buffered"):
        try:
            result = run(True)
        except Exception:
            result = run(False)   # Buffered(1)/pipeline_mode unsupported: fall back
    else:
        result = run(False)

    if emit_attn:
        out, attn = result
        return out, attn
    return result, None


# ----------------------------------------------------------------------------
# Parameter construction (deterministic) and full forward pass
# ----------------------------------------------------------------------------
def make_positional_encoding(max_len, d_model):
    pos = jnp.arange(max_len, dtype=jnp.float32)[:, None]
    i = jnp.arange(0, d_model, 2, dtype=jnp.float32)[None, :]
    div = jnp.exp(-jnp.log(10000.0) * i / d_model)
    pe = jnp.zeros((max_len, d_model), jnp.float32)
    pe = pe.at[:, 0::2].set(jnp.sin(pos * div))
    pe = pe.at[:, 1::2].set(jnp.cos(pos * div))
    return pe


def init_params(key, vocab_size, d_model, num_layers, dim_ff):
    keys = jax.random.split(key, 1 + num_layers)
    embedding = jax.random.normal(keys[0], (vocab_size, d_model),
                                  jnp.float32) * 0.02
    layers = []
    for li in range(num_layers):
        ks = jax.random.split(keys[1 + li], 6)
        wq = jax.random.normal(ks[0], (d_model, d_model), jnp.float32) * 0.02
        wk = jax.random.normal(ks[1], (d_model, d_model), jnp.float32) * 0.02
        wv = jax.random.normal(ks[2], (d_model, d_model), jnp.float32) * 0.02
        wo = jax.random.normal(ks[3], (d_model, d_model), jnp.float32) * 0.02
        w1 = jax.random.normal(ks[4], (d_model, dim_ff), jnp.float32) * 0.02
        w2 = jax.random.normal(ks[5], (dim_ff, d_model), jnp.float32) * 0.02
        layers.append({
            # fused QKV weight (D, 3D); matmul weights stored bf16 (MXU fast path)
            "wqkv": jnp.concatenate([wq, wk, wv], axis=1).astype(jnp.bfloat16),
            "bqkv": jnp.zeros((1, 3 * d_model), jnp.float32),
            "wo": wo.astype(jnp.bfloat16),
            "bo": jnp.zeros((1, d_model), jnp.float32),
            "w1": w1.astype(jnp.bfloat16),
            "b1": jnp.zeros((1, dim_ff), jnp.float32),
            "w2": w2.astype(jnp.bfloat16),
            "b2": jnp.zeros((1, d_model), jnp.float32),
            "ln1_g": jnp.ones((1, d_model), jnp.float32),
            "ln1_b": jnp.zeros((1, d_model), jnp.float32),
            "ln2_g": jnp.ones((1, d_model), jnp.float32),
            "ln2_b": jnp.zeros((1, d_model), jnp.float32),
        })
    return embedding, layers


def transformer_encoder_forward(src_ids, embedding, pe_table, layer_params,
                                d_model, num_heads):
    B, S = src_ids.shape
    D = d_model
    F = layer_params[0]["w1"].shape[1]
    num_layers = len(layer_params)

    # embedding gather stays as XLA glue (data-dependent row gather);
    # inter-layer activations travel as bf16.
    emb = jnp.take(embedding, src_ids, axis=0).astype(jnp.bfloat16)   # (B, S, D)
    pe = pe_table[:S, :]                                              # (S, D)

    vmem_budget, target_rows = _vmem_budget_and_target_rows()
    weight_bytes = 2 * (D * 3 * D + D * D + D * F + F * D)            # bf16 weights
    weight_buffers = 1 if hasattr(pl, "Buffered") else 2
    tb = _choose_batch_tile(B, S, D, F, True, weight_bytes, weight_buffers,
                            vmem_budget, target_rows)

    x = emb
    attn = None
    for li, p in enumerate(layer_params):
        x, attn = encoder_layer(
            x, pe, p, num_heads=num_heads,
            apply_posenc=(li == 0),                   # scale+PE fused into layer 0
            emb_scale=float(d_model) ** 0.5,
            batch_tile=tb,
            emit_attn=(li == num_layers - 1),         # attention only from last layer
            vmem_limit=vmem_budget)
    return x, attn


if __name__ == "__main__":
    # small deterministic config
    vocab_size = 100
    d_model = 32
    num_heads = 4
    num_layers = 2
    dim_ff = 64
    max_len = 64
    B, S = 2, 8

    key = jax.random.PRNGKey(0)
    k_ids, k_params = jax.random.split(key)
    src_ids = jax.random.randint(k_ids, (B, S), 0, vocab_size, dtype=jnp.int32)

    embedding, layer_params = init_params(k_params, vocab_size, d_model,
                                          num_layers, dim_ff)
    pe_table = make_positional_encoding(max_len, d_model)

    out, attn_weights = transformer_encoder_forward(
        src_ids, embedding, pe_table, layer_params, d_model, num_heads)
    jax.block_until_ready((out, attn_weights))

    assert out.shape == (B, S, d_model)
    assert attn_weights.shape == (B, S, S)      # head-averaged (PyTorch default)
    assert bool(jnp.all(jnp.isfinite(out.astype(jnp.float32))))
    assert bool(jnp.all(jnp.isfinite(attn_weights)))
    print("KERNEL_OK")
</pallas_src>

<mosaic_0001>
module attributes {stable_mosaic.version = 11 : i64} {
  func.func @encoder_layer_kernel(%arg0: i32, %arg1: memref<1x8x32xbf16, #tpu.memory_space<vmem>>, %arg2: memref<8x32xf32, #tpu.memory_space<vmem>>, %arg3: memref<32x96xbf16, #tpu.memory_space<vmem>>, %arg4: memref<1x96xf32, #tpu.memory_space<vmem>>, %arg5: memref<32x32xbf16, #tpu.memory_space<vmem>>, %arg6: memref<1x32xf32, #tpu.memory_space<vmem>>, %arg7: memref<1x32xf32, #tpu.memory_space<vmem>>, %arg8: memref<1x32xf32, #tpu.memory_space<vmem>>, %arg9: memref<32x64xbf16, #tpu.memory_space<vmem>>, %arg10: memref<1x64xf32, #tpu.memory_space<vmem>>, %arg11: memref<64x32xbf16, #tpu.memory_space<vmem>>, %arg12: memref<1x32xf32, #tpu.memory_space<vmem>>, %arg13: memref<1x32xf32, #tpu.memory_space<vmem>>, %arg14: memref<1x32xf32, #tpu.memory_space<vmem>>, %arg15: memref<1x8x32xbf16, #tpu.memory_space<vmem>>, %arg16: memref<8x32xbf16, #tpu.memory_space<vmem>>) attributes {dimension_semantics = [#tpu.dimension_semantics<parallel>], iteration_bounds = array<i64: 2>, scalar_prefetch = 0 : i64, scratch_operands = 1 : i64, tpu.core_type = #tpu.core_type<tc>, window_params = [{transform_indices = @transform_0, window_bounds = array<i64: 1, 8, 32>}, {pipeline_mode = #tpu.pipeline_mode<synchronous>, transform_indices = @transform_1, window_bounds = array<i64: 8, 32>}, {pipeline_mode = #tpu.pipeline_mode<synchronous>, transform_indices = @transform_2, window_bounds = array<i64: 32, 96>}, {pipeline_mode = #tpu.pipeline_mode<synchronous>, transform_indices = @transform_3, window_bounds = array<i64: 1, 96>}, {pipeline_mode = #tpu.pipeline_mode<synchronous>, transform_indices = @transform_4, window_bounds = array<i64: 32, 32>}, {pipeline_mode = #tpu.pipeline_mode<synchronous>, transform_indices = @transform_5, window_bounds = array<i64: 1, 32>}, {pipeline_mode = #tpu.pipeline_mode<synchronous>, transform_indices = @transform_6, window_bounds = array<i64: 1, 32>}, {pipeline_mode = #tpu.pipeline_mode<synchronous>, transform_indices = @transform_7, window_bounds = array<i64: 1, 32>}, {pipeline_mode = #tpu.pipeline_mode<synchronous>, transform_indices = @transform_8, window_bounds = array<i64: 32, 64>}, {pipeline_mode = #tpu.pipeline_mode<synchronous>, transform_indices = @transform_9, window_bounds = array<i64: 1, 64>}, {pipeline_mode = #tpu.pipeline_mode<synchronous>, transform_indices = @transform_10, window_bounds = array<i64: 64, 32>}, {pipeline_mode = #tpu.pipeline_mode<synchronous>, transform_indices = @transform_11, window_bounds = array<i64: 1, 32>}, {pipeline_mode = #tpu.pipeline_mode<synchronous>, transform_indices = @transform_12, window_bounds = array<i64: 1, 32>}, {pipeline_mode = #tpu.pipeline_mode<synchronous>, transform_indices = @transform_13, window_bounds = array<i64: 1, 32>}, {transform_indices = @transform_14, window_bounds = array<i64: 1, 8, 32>}]} {
    %c0 = arith.constant 0 : index
    %c0_0 = arith.constant 0 : index
    %c0_1 = arith.constant 0 : index
    %0 = vector.load %arg1[%c0, %c0_0, %c0_1] : memref<1x8x32xbf16, #tpu.memory_space<vmem>>, vector<1x8x32xbf16>
    %1 = arith.extf %0 : vector<1x8x32xbf16> to vector<1x8x32xf32>
    %cst = arith.constant 5.65685415 : f32
    %2 = vector.broadcast %cst : f32 to vector<1x8x32xf32>
    %3 = arith.mulf %1, %2 : vector<1x8x32xf32>
    %c0_2 = arith.constant 0 : index
    %c0_3 = arith.constant 0 : index
    %4 = vector.load %arg2[%c0_2, %c0_3] : memref<8x32xf32, #tpu.memory_space<vmem>>, vector<8x32xf32>
    %5 = vector.shape_cast %4 : vector<8x32xf32> to vector<1x8x32xf32>
    %6 = arith.addf %3, %5 : vector<1x8x32xf32>
    %7 = vector.shape_cast %6 : vector<1x8x32xf32> to vector<8x32xf32>
    %8 = arith.truncf %7 : vector<8x32xf32> to vector<8x32xbf16>
    %c0_4 = arith.constant 0 : index
    %c0_5 = arith.constant 0 : index
    %9 = vector.load %arg3[%c0_4, %c0_5] : memref<32x96xbf16, #tpu.memory_space<vmem>>, vector<32x96xbf16>
    %cst_6 = arith.constant dense<0.000000e+00> : vector<8x96xf32>
    %10 = tpu.matmul %8, %9, %cst_6 {dimension_numbers = #tpu.dot_dimension_numbers<[1], [0], [0], [1], [0, 0, 1, 1], [], []>} : vector<8x32xbf16>, vector<32x96xbf16>, vector<8x96xf32> -> vector<8x96xf32>
    %c0_7 = arith.constant 0 : index
    %c0_8 = arith.constant 0 : index
    %11 = vector.load %arg4[%c0_7, %c0_8] : memref<1x96xf32, #tpu.memory_space<vmem>>, vector<1x96xf32>
    %12 = vector.broadcast %11 : vector<1x96xf32> to vector<8x96xf32>
    %13 = arith.addf %10, %12 : vector<8x96xf32>
    %14 = vector.extract_strided_slice %13 {offsets = [0, 0], sizes = [8, 8], strides = [1, 1]} : vector<8x96xf32> to vector<8x8xf32>
    %cst_9 = arith.constant 0.353553385 : f32
    %15 = vector.broadcast %cst_9 : f32 to vector<8x8xf32>
    %16 = arith.mulf %14, %15 : vector<8x8xf32>
    %17 = vector.shape_cast %16 : vector<8x8xf32> to vector<1x8x8xf32>
    %18 = vector.extract_strided_slice %13 {offsets = [0, 32], sizes = [8, 8], strides = [1, 1]} : vector<8x96xf32> to vector<8x8xf32>
    %19 = vector.shape_cast %18 : vector<8x8xf32> to vector<1x8x8xf32>
    %20 = vector.extract_strided_slice %13 {offsets = [0, 64], sizes = [8, 8], strides = [1, 1]} : vector<8x96xf32> to vector<8x8xf32>
    %21 = vector.shape_cast %20 : vector<8x8xf32> to vector<1x8x8xf32>
    %22 = arith.truncf %17 : vector<1x8x8xf32> to vector<1x8x8xbf16>
    %23 = arith.truncf %19 : vector<1x8x8xf32> to vector<1x8x8xbf16>
    "tpu.trace_start"() <{level = 10 : i32, message = "bqd,bkd->bqk"}> : () -> ()
    %cst_10 = arith.constant dense<0.000000e+00> : vector<1x8x8xf32>
    %24 = tpu.matmul %22, %23, %cst_10 {dimension_numbers = #tpu.dot_dimension_numbers<[2], [2], [1], [1], [0, 0, 0, 1, 1, 1], [0], [0]>} : vector<1x8x8xbf16>, vector<1x8x8xbf16>, vector<1x8x8xf32> -> vector<1x8x8xf32>
    "tpu.trace_stop"() : () -> ()
    %cst_11 = arith.constant dense<0xFF800000> : vector<1x8xf32>
    %25 = vector.multi_reduction <maximumf>, %24, %cst_11 [2] : vector<1x8x8xf32> to vector<1x8xf32>
    %26 = vector.shape_cast %25 : vector<1x8xf32> to vector<1x8x1xf32>
    %27 = vector.broadcast %26 : vector<1x8x1xf32> to vector<1x8x8xf32>
    %28 = arith.subf %24, %27 : vector<1x8x8xf32>
    %29 = math.exp %28 : vector<1x8x8xf32>
    %cst_12 = arith.constant dense<0.000000e+00> : vector<1x8xf32>
    %30 = vector.multi_reduction <add>, %29, %cst_12 [2] : vector<1x8x8xf32> to vector<1x8xf32>
    %31 = vector.shape_cast %30 : vector<1x8xf32> to vector<1x8x1xf32>
    %32 = tpu.reciprocal %31 {approx = true} : vector<1x8x1xf32> -> vector<1x8x1xf32>
    %33 = vector.broadcast %32 : vector<1x8x1xf32> to vector<1x8x8xf32>
    %34 = arith.mulf %29, %33 : vector<1x8x8xf32>
    %35 = arith.truncf %34 : vector<1x8x8xf32> to vector<1x8x8xbf16>
    %36 = arith.truncf %21 : vector<1x8x8xf32> to vector<1x8x8xbf16>
    "tpu.trace_start"() <{level = 10 : i32, message = "bqk,bkd->bqd"}> : () -> ()
    %cst_13 = arith.constant dense<0.000000e+00> : vector<1x8x8xf32>
    %37 = tpu.matmul %35, %36, %cst_13 {dimension_numbers = #tpu.dot_dimension_numbers<[2], [1], [1], [2], [0, 0, 0, 1, 1, 2], [0], [0]>} : vector<1x8x8xbf16>, vector<1x8x8xbf16>, vector<1x8x8xf32> -> vector<1x8x8xf32>
    "tpu.trace_stop"() : () -> ()
    %38 = vector.shape_cast %37 : vector<1x8x8xf32> to vector<8x8xf32>
    %39 = arith.truncf %38 : vector<8x8xf32> to vector<8x8xbf16>
    %c0_14 = arith.constant 0 : index
    %c0_15 = arith.constant 0 : index
    %40 = vector.load %arg16[%c0_14, %c0_15] : memref<8x32xbf16, #tpu.memory_space<vmem>>, vector<8x8xbf16>
    tpu.vector_store %arg16[%c0_14, %c0_15], %39 {strides = array<i32>} : memref<8x32xbf16, #tpu.memory_space<vmem>>, vector<8x8xbf16>,
    %41 = vector.extract_strided_slice %13 {offsets = [0, 8], sizes = [8, 8], strides = [1, 1]} : vector<8x96xf32> to vector<8x8xf32>
    %cst_16 = arith.constant 0.353553385 : f32
    %42 = vector.broadcast %cst_16 : f32 to vector<8x8xf32>
    %43 = arith.mulf %41, %42 : vector<8x8xf32>
    %44 = vector.shape_cast %43 : vector<8x8xf32> to vector<1x8x8xf32>
    %45 = vector.extract_strided_slice %13 {offsets = [0, 40], sizes = [8, 8], strides = [1, 1]} : vector<8x96xf32> to vector<8x8xf32>
    %46 = vector.shape_cast %45 : vector<8x8xf32> to vector<1x8x8xf32>
    %47 = vector.extract_strided_slice %13 {offsets = [0, 72], sizes = [8, 8], strides = [1, 1]} : vector<8x96xf32> to vector<8x8xf32>
    %48 = vector.shape_cast %47 : vector<8x8xf32> to vector<1x8x8xf32>
    %49 = arith.truncf %44 : vector<1x8x8xf32> to vector<1x8x8xbf16>
    %50 = arith.truncf %46 : vector<1x8x8xf32> to vector<1x8x8xbf16>
    "tpu.trace_start"() <{level = 10 : i32, message = "bqd,bkd->bqk"}> : () -> ()
    %cst_17 = arith.constant dense<0.000000e+00> : vector<1x8x8xf32>
    %51 = tpu.matmul %49, %50, %cst_17 {dimension_numbers = #tpu.dot_dimension_numbers<[2], [2], [1], [1], [0, 0, 0, 1, 1, 1], [0], [0]>} : vector<1x8x8xbf16>, vector<1x8x8xbf16>, vector<1x8x8xf32> -> vector<1x8x8xf32>
    "tpu.trace_stop"() : () -> ()
    %cst_18 = arith.constant dense<0xFF800000> : vector<1x8xf32>
    %52 = vector.multi_reduction <maximumf>, %51, %cst_18 [2] : vector<1x8x8xf32> to vector<1x8xf32>
    %53 = vector.shape_cast %52 : vector<1x8xf32> to vector<1x8x1xf32>
    %54 = vector.broadcast %53 : vector<1x8x1xf32> to vector<1x8x8xf32>
    %55 = arith.subf %51, %54 : vector<1x8x8xf32>
    %56 = math.exp %55 : vector<1x8x8xf32>
    %cst_19 = arith.constant dense<0.000000e+00> : vector<1x8xf32>
    %57 = vector.multi_reduction <add>, %56, %cst_19 [2] : vector<1x8x8xf32> to vector<1x8xf32>
    %58 = vector.shape_cast %57 : vector<1x8xf32> to vector<1x8x1xf32>
    %59 = tpu.reciprocal %58 {approx = true} : vector<1x8x1xf32> -> vector<1x8x1xf32>
    %60 = vector.broadcast %59 : vector<1x8x1xf32> to vector<1x8x8xf32>
    %61 = arith.mulf %56, %60 : vector<1x8x8xf32>
    %62 = arith.truncf %61 : vector<1x8x8xf32> to vector<1x8x8xbf16>
    %63 = arith.truncf %48 : vector<1x8x8xf32> to vector<1x8x8xbf16>
    "tpu.trace_start"() <{level = 10 : i32, message = "bqk,bkd->bqd"}> : () -> ()
    %cst_20 = arith.constant dense<0.000000e+00> : vector<1x8x8xf32>
    %64 = tpu.matmul %62, %63, %cst_20 {dimension_numbers = #tpu.dot_dimension_numbers<[2], [1], [1], [2], [0, 0, 0, 1, 1, 2], [0], [0]>} : vector<1x8x8xbf16>, vector<1x8x8xbf16>, vector<1x8x8xf32> -> vector<1x8x8xf32>
    "tpu.trace_stop"() : () -> ()
    %65 = vector.shape_cast %64 : vector<1x8x8xf32> to vector<8x8xf32>
    %66 = arith.truncf %65 : vector<8x8xf32> to vector<8x8xbf16>
    %c0_21 = arith.constant 0 : index
    %c8 = arith.constant 8 : index
    %67 = vector.load %arg16[%c0_21, %c8] : memref<8x32xbf16, #tpu.memory_space<vmem>>, vector<8x8xbf16>
    tpu.vector_store %arg16[%c0_21, %c8], %66 {strides = array<i32>} : memref<8x32xbf16, #tpu.memory_space<vmem>>, vector<8x8xbf16>,
    %68 = vector.extract_strided_slice %13 {offsets = [0, 16], sizes = [8, 8], strides = [1, 1]} : vector<8x96xf32> to vector<8x8xf32>
    %cst_22 = arith.constant 0.353553385 : f32
    %69 = vector.broadcast %cst_22 : f32 to vector<8x8xf32>
    %70 = arith.mulf %68, %69 : vector<8x8xf32>
    %71 = vector.shape_cast %70 : vector<8x8xf32> to vector<1x8x8xf32>
    %72 = vector.extract_strided_slice %13 {offsets = [0, 48], sizes = [8, 8], strides = [1, 1]} : vector<8x96xf32> to vector<8x8xf32>
    %73 = vector.shape_cast %72 : vector<8x8xf32> to vector<1x8x8xf32>
    %74 = vector.extract_strided_slice %13 {offsets = [0, 80], sizes = [8, 8], strides = [1, 1]} : vector<8x96xf32> to vector<8x8xf32>
    %75 = vector.shape_cast %74 : vector<8x8xf32> to vector<1x8x8xf32>
    %76 = arith.truncf %71 : vector<1x8x8xf32> to vector<1x8x8xbf16>
    %77 = arith.truncf %73 : vector<1x8x8xf32> to vector<1x8x8xbf16>
    "tpu.trace_start"() <{level = 10 : i32, message = "bqd,bkd->bqk"}> : () -> ()
    %cst_23 = arith.constant dense<0.000000e+00> : vector<1x8x8xf32>
    %78 = tpu.matmul %76, %77, %cst_23 {dimension_numbers = #tpu.dot_dimension_numbers<[2], [2], [1], [1], [0, 0, 0, 1, 1, 1], [0], [0]>} : vector<1x8x8xbf16>, vector<1x8x8xbf16>, vector<1x8x8xf32> -> vector<1x8x8xf32>
    "tpu.trace_stop"() : () -> ()
    %cst_24 = arith.constant dense<0xFF800000> : vector<1x8xf32>
    %79 = vector.multi_reduction <maximumf>, %78, %cst_24 [2] : vector<1x8x8xf32> to vector<1x8xf32>
    %80 = vector.shape_cast %79 : vector<1x8xf32> to vector<1x8x1xf32>
    %81 = vector.broadcast %80 : vector<1x8x1xf32> to vector<1x8x8xf32>
    %82 = arith.subf %78, %81 : vector<1x8x8xf32>
    %83 = math.exp %82 : vector<1x8x8xf32>
    %cst_25 = arith.constant dense<0.000000e+00> : vector<1x8xf32>
    %84 = vector.multi_reduction <add>, %83, %cst_25 [2] : vector<1x8x8xf32> to vector<1x8xf32>
    %85 = vector.shape_cast %84 : vector<1x8xf32> to vector<1x8x1xf32>
    %86 = tpu.reciprocal %85 {approx = true} : vector<1x8x1xf32> -> vector<1x8x1xf32>
    %87 = vector.broadcast %86 : vector<1x8x1xf32> to vector<1x8x8xf32>
    %88 = arith.mulf %83, %87 : vector<1x8x8xf32>
    %89 = arith.truncf %88 : vector<1x8x8xf32> to vector<1x8x8xbf16>
    %90 = arith.truncf %75 : vector<1x8x8xf32> to vector<1x8x8xbf16>
    "tpu.trace_start"() <{level = 10 : i32, message = "bqk,bkd->bqd"}> : () -> ()
    %cst_26 = arith.constant dense<0.000000e+00> : vector<1x8x8xf32>
    %91 = tpu.matmul %89, %90, %cst_26 {dimension_numbers = #tpu.dot_dimension_numbers<[2], [1], [1], [2], [0, 0, 0, 1, 1, 2], [0], [0]>} : vector<1x8x8xbf16>, vector<1x8x8xbf16>, vector<1x8x8xf32> -> vector<1x8x8xf32>
    "tpu.trace_stop"() : () -> ()
    %92 = vector.shape_cast %91 : vector<1x8x8xf32> to vector<8x8xf32>
    %93 = arith.truncf %92 : vector<8x8xf32> to vector<8x8xbf16>
    %c0_27 = arith.constant 0 : index
    %c16 = arith.constant 16 : index
    %94 = vector.load %arg16[%c0_27, %c16] : memref<8x32xbf16, #tpu.memory_space<vmem>>, vector<8x8xbf16>
    tpu.vector_store %arg16[%c0_27, %c16], %93 {strides = array<i32>} : memref<8x32xbf16, #tpu.memory_space<vmem>>, vector<8x8xbf16>,
    %95 = vector.extract_strided_slice %13 {offsets = [0, 24], sizes = [8, 8], strides = [1, 1]} : vector<8x96xf32> to vector<8x8xf32>
    %cst_28 = arith.constant 0.353553385 : f32
    %96 = vector.broadcast %cst_28 : f32 to vector<8x8xf32>
    %97 = arith.mulf %95, %96 : vector<8x8xf32>
    %98 = vector.shape_cast %97 : vector<8x8xf32> to vector<1x8x8xf32>
    %99 = vector.extract_strided_slice %13 {offsets = [0, 56], sizes = [8, 8], strides = [1, 1]} : vector<8x96xf32> to vector<8x8xf32>
    %100 = vector.shape_cast %99 : vector<8x8xf32> to vector<1x8x8xf32>
    %101 = vector.extract_strided_slice %13 {offsets = [0, 88], sizes = [8, 8], strides = [1, 1]} : vector<8x96xf32> to vector<8x8xf32>
    %102 = vector.shape_cast %101 : vector<8x8xf32> to vector<1x8x8xf32>
    %103 = arith.truncf %98 : vector<1x8x8xf32> to vector<1x8x8xbf16>
    %104 = arith.truncf %100 : vector<1x8x8xf32> to vector<1x8x8xbf16>
    "tpu.trace_start"() <{level = 10 : i32, message = "bqd,bkd->bqk"}> : () -> ()
    %cst_29 = arith.constant dense<0.000000e+00> : vector<1x8x8xf32>
    %105 = tpu.matmul %103, %104, %cst_29 {dimension_numbers = #tpu.dot_dimension_numbers<[2], [2], [1], [1], [0, 0, 0, 1, 1, 1], [0], [0]>} : vector<1x8x8xbf16>, vector<1x8x8xbf16>, vector<1x8x8xf32> -> vector<1x8x8xf32>
    "tpu.trace_stop"() : () -> ()
    %cst_30 = arith.constant dense<0xFF800000> : vector<1x8xf32>
    %106 = vector.multi_reduction <maximumf>, %105, %cst_30 [2] : vector<1x8x8xf32> to vector<1x8xf32>
    %107 = vector.shape_cast %106 : vector<1x8xf32> to vector<1x8x1xf32>
    %108 = vector.broadcast %107 : vector<1x8x1xf32> to vector<1x8x8xf32>
    %109 = arith.subf %105, %108 : vector<1x8x8xf32>
    %110 = math.exp %109 : vector<1x8x8xf32>
    %cst_31 = arith.constant dense<0.000000e+00> : vector<1x8xf32>
    %111 = vector.multi_reduction <add>, %110, %cst_31 [2] : vector<1x8x8xf32> to vector<1x8xf32>
    %112 = vector.shape_cast %111 : vector<1x8xf32> to vector<1x8x1xf32>
    %113 = tpu.reciprocal %112 {approx = true} : vector<1x8x1xf32> -> vector<1x8x1xf32>
    %114 = vector.broadcast %113 : vector<1x8x1xf32> to vector<1x8x8xf32>
    %115 = arith.mulf %110, %114 : vector<1x8x8xf32>
    %116 = arith.truncf %115 : vector<1x8x8xf32> to vector<1x8x8xbf16>
    %117 = arith.truncf %102 : vector<1x8x8xf32> to vector<1x8x8xbf16>
    "tpu.trace_start"() <{level = 10 : i32, message = "bqk,bkd->bqd"}> : () -> ()
    %cst_32 = arith.constant dense<0.000000e+00> : vector<1x8x8xf32>
    %118 = tpu.matmul %116, %117, %cst_32 {dimension_numbers = #tpu.dot_dimension_numbers<[2], [1], [1], [2], [0, 0, 0, 1, 1, 2], [0], [0]>} : vector<1x8x8xbf16>, vector<1x8x8xbf16>, vector<1x8x8xf32> -> vector<1x8x8xf32>
    "tpu.trace_stop"() : () -> ()
    %119 = vector.shape_cast %118 : vector<1x8x8xf32> to vector<8x8xf32>
    %120 = arith.truncf %119 : vector<8x8xf32> to vector<8x8xbf16>
    %c0_33 = arith.constant 0 : index
    %c24 = arith.constant 24 : index
    %121 = vector.load %arg16[%c0_33, %c24] : memref<8x32xbf16, #tpu.memory_space<vmem>>, vector<8x8xbf16>
    tpu.vector_store %arg16[%c0_33, %c24], %120 {strides = array<i32>} : memref<8x32xbf16, #tpu.memory_space<vmem>>, vector<8x8xbf16>,
    %c0_34 = arith.constant 0 : index
    %c0_35 = arith.constant 0 : index
    %122 = vector.load %arg16[%c0_34, %c0_35] : memref<8x32xbf16, #tpu.memory_space<vmem>>, vector<8x32xbf16>
    %c0_36 = arith.constant 0 : index
    %c0_37 = arith.constant 0 : index
    %123 = vector.load %arg5[%c0_36, %c0_37] : memref<32x32xbf16, #tpu.memory_space<vmem>>, vector<32x32xbf16>
    %cst_38 = arith.constant dense<0.000000e+00> : vector<8x32xf32>
    %124 = tpu.matmul %122, %123, %cst_38 {dimension_numbers = #tpu.dot_dimension_numbers<[1], [0], [0], [1], [0, 0, 1, 1], [], []>} : vector<8x32xbf16>, vector<32x32xbf16>, vector<8x32xf32> -> vector<8x32xf32>
    %c0_39 = arith.constant 0 : index
    %c0_40 = arith.constant 0 : index
    %125 = vector.load %arg6[%c0_39, %c0_40] : memref<1x32xf32, #tpu.memory_space<vmem>>, vector<1x32xf32>
    %126 = vector.broadcast %125 : vector<1x32xf32> to vector<8x32xf32>
    %127 = arith.addf %124, %126 : vector<8x32xf32>
    %128 = arith.addf %7, %127 : vector<8x32xf32>
    %cst_41 = arith.constant dense<0.000000e+00> : vector<8xf32>
    %129 = vector.multi_reduction <add>, %128, %cst_41 [1] : vector<8x32xf32> to vector<8xf32>
    %130 = vector.shape_cast %129 : vector<8xf32> to vector<8x1xf32>
    %cst_42 = arith.constant 3.200000e+01 : f32
    %131 = vector.broadcast %cst_42 : f32 to vector<8x1xf32>
    %132 = arith.divf %130, %131 : vector<8x1xf32>
    %133 = vector.broadcast %132 : vector<8x1xf32> to vector<8x32xf32>
    %134 = arith.subf %128, %133 : vector<8x32xf32>
    %135 = arith.mulf %134, %134 : vector<8x32xf32>
    %cst_43 = arith.constant dense<0.000000e+00> : vector<8xf32>
    %136 = vector.multi_reduction <add>, %135, %cst_43 [1] : vector<8x32xf32> to vector<8xf32>
    %137 = vector.shape_cast %136 : vector<8xf32> to vector<8x1xf32>
    %cst_44 = arith.constant 3.200000e+01 : f32
    %138 = vector.broadcast %cst_44 : f32 to vector<8x1xf32>
    %139 = arith.divf %137, %138 : vector<8x1xf32>
    %140 = vector.broadcast %132 : vector<8x1xf32> to vector<8x32xf32>
    %141 = arith.subf %128, %140 : vector<8x32xf32>
    %cst_45 = arith.constant 9.99999974E-6 : f32
    %142 = vector.broadcast %cst_45 : f32 to vector<8x1xf32>
    %143 = arith.addf %139, %142 : vector<8x1xf32>
    %144 = math.rsqrt %143 : vector<8x1xf32>
    %145 = vector.broadcast %144 : vector<8x1xf32> to vector<8x32xf32>
    %146 = arith.mulf %141, %145 : vector<8x32xf32>
    %c0_46 = arith.constant 0 : index
    %c0_47 = arith.constant 0 : index
    %147 = vector.load %arg7[%c0_46, %c0_47] : memref<1x32xf32, #tpu.memory_space<vmem>>, vector<1x32xf32>
    %148 = vector.broadcast %147 : vector<1x32xf32> to vector<8x32xf32>
    %149 = arith.mulf %146, %148 : vector<8x32xf32>
    %c0_48 = arith.constant 0 : index
    %c0_49 = arith.constant 0 : index
    %150 = vector.load %arg8[%c0_48, %c0_49] : memref<1x32xf32, #tpu.memory_space<vmem>>, vector<1x32xf32>
    %151 = vector.broadcast %150 : vector<1x32xf32> to vector<8x32xf32>
    %152 = arith.addf %149, %151 : vector<8x32xf32>
    %153 = arith.truncf %152 : vector<8x32xf32> to vector<8x32xbf16>
    %c0_50 = arith.constant 0 : index
    %c0_51 = arith.constant 0 : index
    %154 = vector.load %arg9[%c0_50, %c0_51] : memref<32x64xbf16, #tpu.memory_space<vmem>>, vector<32x64xbf16>
    %cst_52 = arith.constant dense<0.000000e+00> : vector<8x64xf32>
    %155 = tpu.matmul %153, %154, %cst_52 {dimension_numbers = #tpu.dot_dimension_numbers<[1], [0], [0], [1], [0, 0, 1, 1], [], []>} : vector<8x32xbf16>, vector<32x64xbf16>, vector<8x64xf32> -> vector<8x64xf32>
    %c0_53 = arith.constant 0 : index
    %c0_54 = arith.constant 0 : index
    %156 = vector.load %arg10[%c0_53, %c0_54] : memref<1x64xf32, #tpu.memory_space<vmem>>, vector<1x64xf32>
    %157 = vector.broadcast %156 : vector<1x64xf32> to vector<8x64xf32>
    %158 = arith.addf %155, %157 : vector<8x64xf32>
    %cst_55 = arith.constant 0.000000e+00 : f32
    %159 = vector.broadcast %cst_55 : f32 to vector<8x64xf32>
    %160 = arith.maximumf %158, %159 : vector<8x64xf32>
    %161 = arith.truncf %160 : vector<8x64xf32> to vector<8x64xbf16>
    %c0_56 = arith.constant 0 : index
    %c0_57 = arith.constant 0 : index
    %162 = vector.load %arg11[%c0_56, %c0_57] : memref<64x32xbf16, #tpu.memory_space<vmem>>, vector<64x32xbf16>
    %cst_58 = arith.constant dense<0.000000e+00> : vector<8x32xf32>
    %163 = tpu.matmul %161, %162, %cst_58 {dimension_numbers = #tpu.dot_dimension_numbers<[1], [0], [0], [1], [0, 0, 1, 1], [], []>} : vector<8x64xbf16>, vector<64x32xbf16>, vector<8x32xf32> -> vector<8x32xf32>
    %c0_59 = arith.constant 0 : index
    %c0_60 = arith.constant 0 : index
    %164 = vector.load %arg12[%c0_59, %c0_60] : memref<1x32xf32, #tpu.memory_space<vmem>>, vector<1x32xf32>
    %165 = vector.broadcast %164 : vector<1x32xf32> to vector<8x32xf32>
    %166 = arith.addf %163, %165 : vector<8x32xf32>
    %167 = arith.addf %152, %166 : vector<8x32xf32>
    %cst_61 = arith.constant dense<0.000000e+00> : vector<8xf32>
    %168 = vector.multi_reduction <add>, %167, %cst_61 [1] : vector<8x32xf32> to vector<8xf32>
    %169 = vector.shape_cast %168 : vector<8xf32> to vector<8x1xf32>
    %cst_62 = arith.constant 3.200000e+01 : f32
    %170 = vector.broadcast %cst_62 : f32 to vector<8x1xf32>
    %171 = arith.divf %169, %170 : vector<8x1xf32>
    %172 = vector.broadcast %171 : vector<8x1xf32> to vector<8x32xf32>
    %173 = arith.subf %167, %172 : vector<8x32xf32>
    %174 = arith.mulf %173, %173 : vector<8x32xf32>
    %cst_63 = arith.constant dense<0.000000e+00> : vector<8xf32>
    %175 = vector.multi_reduction <add>, %174, %cst_63 [1] : vector<8x32xf32> to vector<8xf32>
    %176 = vector.shape_cast %175 : vector<8xf32> to vector<8x1xf32>
    %cst_64 = arith.constant 3.200000e+01 : f32
    %177 = vector.broadcast %cst_64 : f32 to vector<8x1xf32>
    %178 = arith.divf %176, %177 : vector<8x1xf32>
    %179 = vector.broadcast %171 : vector<8x1xf32> to vector<8x32xf32>
    %180 = arith.subf %167, %179 : vector<8x32xf32>
    %cst_65 = arith.constant 9.99999974E-6 : f32
    %181 = vector.broadcast %cst_65 : f32 to vector<8x1xf32>
    %182 = arith.addf %178, %181 : vector<8x1xf32>
    %183 = math.rsqrt %182 : vector<8x1xf32>
    %184 = vector.broadcast %183 : vector<8x1xf32> to vector<8x32xf32>
    %185 = arith.mulf %180, %184 : vector<8x32xf32>
    %c0_66 = arith.constant 0 : index
    %c0_67 = arith.constant 0 : index
    %186 = vector.load %arg13[%c0_66, %c0_67] : memref<1x32xf32, #tpu.memory_space<vmem>>, vector<1x32xf32>
    %187 = vector.broadcast %186 : vector<1x32xf32> to vector<8x32xf32>
    %188 = arith.mulf %185, %187 : vector<8x32xf32>
    %c0_68 = arith.constant 0 : index
    %c0_69 = arith.constant 0 : index
    %189 = vector.load %arg14[%c0_68, %c0_69] : memref<1x32xf32, #tpu.memory_space<vmem>>, vector<1x32xf32>
    %190 = vector.broadcast %189 : vector<1x32xf32> to vector<8x32xf32>
    %191 = arith.addf %188, %190 : vector<8x32xf32>
    %192 = vector.shape_cast %191 : vector<8x32xf32> to vector<1x8x32xf32>
    %193 = arith.truncf %192 : vector<1x8x32xf32> to vector<1x8x32xbf16>
    %c0_70 = arith.constant 0 : index
    %c0_71 = arith.constant 0 : index
    %c0_72 = arith.constant 0 : index
    %194 = vector.load %arg15[%c0_70, %c0_71, %c0_72] : memref<1x8x32xbf16, #tpu.memory_space<vmem>>, vector<1x8x32xbf16>
    tpu.vector_store %arg15[%c0_70, %c0_71, %c0_72], %193 {strides = array<i32>} : memref<1x8x32xbf16, #tpu.memory_space<vmem>>, vector<1x8x32xbf16>,
    return
  }
  func.func @transform_0(%arg0: i32) -> (i32, i32, i32) {
    %c0_i32 = arith.constant 0 : i32
    %c0_i32_0 = arith.constant 0 : i32
    %c0_i32_1 = arith.constant 0 : i32
    return %arg0, %c0_i32, %c0_i32_0 : i32, i32, i32
  }
  func.func @transform_1(%arg0: i32) -> (i32, i32) {
    %c0_i32 = arith.constant 0 : i32
    %c0_i32_0 = arith.constant 0 : i32
    %c0_i32_1 = arith.constant 0 : i32
    return %c0_i32, %c0_i32_0 : i32, i32
  }
  func.func @transform_2(%arg0: i32) -> (i32, i32) {
    %c0_i32 = arith.constant 0 : i32
    %c0_i32_0 = arith.constant 0 : i32
    %c0_i32_1 = arith.constant 0 : i32
    return %c0_i32, %c0_i32_0 : i32, i32
  }
  func.func @transform_3(%arg0: i32) -> (i32, i32) {
    %c0_i32 = arith.constant 0 : i32
    %c0_i32_0 = arith.constant 0 : i32
    %c0_i32_1 = arith.constant 0 : i32
    return %c0_i32, %c0_i32_0 : i32, i32
  }
  func.func @transform_4(%arg0: i32) -> (i32, i32) {
    %c0_i32 = arith.constant 0 : i32
    %c0_i32_0 = arith.constant 0 : i32
    %c0_i32_1 = arith.constant 0 : i32
    return %c0_i32, %c0_i32_0 : i32, i32
  }
  func.func @transform_5(%arg0: i32) -> (i32, i32) {
    %c0_i32 = arith.constant 0 : i32
    %c0_i32_0 = arith.constant 0 : i32
    %c0_i32_1 = arith.constant 0 : i32
    return %c0_i32, %c0_i32_0 : i32, i32
  }
  func.func @transform_6(%arg0: i32) -> (i32, i32) {
    %c0_i32 = arith.constant 0 : i32
    %c0_i32_0 = arith.constant 0 : i32
    %c0_i32_1 = arith.constant 0 : i32
    return %c0_i32, %c0_i32_0 : i32, i32
  }
  func.func @transform_7(%arg0: i32) -> (i32, i32) {
    %c0_i32 = arith.constant 0 : i32
    %c0_i32_0 = arith.constant 0 : i32
    %c0_i32_1 = arith.constant 0 : i32
    return %c0_i32, %c0_i32_0 : i32, i32
  }
  func.func @transform_8(%arg0: i32) -> (i32, i32) {
    %c0_i32 = arith.constant 0 : i32
    %c0_i32_0 = arith.constant 0 : i32
    %c0_i32_1 = arith.constant 0 : i32
    return %c0_i32, %c0_i32_0 : i32, i32
  }
  func.func @transform_9(%arg0: i32) -> (i32, i32) {
    %c0_i32 = arith.constant 0 : i32
    %c0_i32_0 = arith.constant 0 : i32
    %c0_i32_1 = arith.constant 0 : i32
    return %c0_i32, %c0_i32_0 : i32, i32
  }
  func.func @transform_10(%arg0: i32) -> (i32, i32) {
    %c0_i32 = arith.constant 0 : i32
    %c0_i32_0 = arith.constant 0 : i32
    %c0_i32_1 = arith.constant 0 : i32
    return %c0_i32, %c0_i32_0 : i32, i32
  }
  func.func @transform_11(%arg0: i32) -> (i32, i32) {
    %c0_i32 = arith.constant 0 : i32
    %c0_i32_0 = arith.constant 0 : i32
    %c0_i32_1 = arith.constant 0 : i32
    return %c0_i32, %c0_i32_0 : i32, i32
  }
  func.func @transform_12(%arg0: i32) -> (i32, i32) {
    %c0_i32 = arith.constant 0 : i32
    %c0_i32_0 = arith.constant 0 : i32
    %c0_i32_1 = arith.constant 0 : i32
    return %c0_i32, %c0_i32_0 : i32, i32
  }
  func.func @transform_13(%arg0: i32) -> (i32, i32) {
    %c0_i32 = arith.constant 0 : i32
    %c0_i32_0 = arith.constant 0 : i32
    %c0_i32_1 = arith.constant 0 : i32
    return %c0_i32, %c0_i32_0 : i32, i32
  }
  func.func @transform_14(%arg0: i32) -> (i32, i32, i32) {
    %c0_i32 = arith.constant 0 : i32
    %c0_i32_0 = arith.constant 0 : i32
    %c0_i32_1 = arith.constant 0 : i32
    return %arg0, %c0_i32, %c0_i32_0 : i32, i32, i32
  }
}

module attributes {stable_mosaic.version = 11 : i64} {
  func.func @encoder_layer_kernel(%arg0: i32, %arg1: memref<1x8x32xbf16, #tpu.memory_space<vmem>>, %arg2: memref<8x32xf32, #tpu.memory_space<vmem>>, %arg3: memref<32x96xbf16, #tpu.memory_space<vmem>>, %arg4: memref<1x96xf32, #tpu.memory_space<vmem>>, %arg5: memref<32x32xbf16, #tpu.memory_space<vmem>>, %arg6: memref<1x32xf32, #tpu.memory_space<vmem>>, %arg7: memref<1x32xf32, #tpu.memory_space<vmem>>, %arg8: memref<1x32xf32, #tpu.memory_space<vmem>>, %arg9: memref<32x64xbf16, #tpu.memory_space<vmem>>, %arg10: memref<1x64xf32, #tpu.memory_space<vmem>>, %arg11: memref<64x32xbf16, #tpu.memory_space<vmem>>, %arg12: memref<1x32xf32, #tpu.memory_space<vmem>>, %arg13: memref<1x32xf32, #tpu.memory_space<vmem>>, %arg14: memref<1x32xf32, #tpu.memory_space<vmem>>, %arg15: memref<1x8x32xbf16, #tpu.memory_space<vmem>>, %arg16: memref<8x32xbf16, #tpu.memory_space<vmem>>) attributes {dimension_semantics = [#tpu.dimension_semantics<parallel>], iteration_bounds = array<i64: 2>, scalar_prefetch = 0 : i64, scratch_operands = 1 : i64, tpu.core_type = #tpu.core_type<tc>, window_params = [{transform_indices = @transform_0, window_bounds = array<i64: 1, 8, 32>}, {pipeline_mode = #tpu.pipeline_mode<synchronous>, transform_indices = @transform_1, window_bounds = array<i64: 8, 32>}, {pipeline_mode = #tpu.pipeline_mode<synchronous>, transform_indices = @transform_2, window_bounds = array<i64: 32, 96>}, {pipeline_mode = #tpu.pipeline_mode<synchronous>, transform_indices = @transform_3, window_bounds = array<i64: 1, 96>}, {pipeline_mode = #tpu.pipeline_mode<synchronous>, transform_indices = @transform_4, window_bounds = array<i64: 32, 32>}, {pipeline_mode = #tpu.pipeline_mode<synchronous>, transform_indices = @transform_5, window_bounds = array<i64: 1, 32>}, {pipeline_mode = #tpu.pipeline_mode<synchronous>, transform_indices = @transform_6, window_bounds = array<i64: 1, 32>}, {pipeline_mode = #tpu.pipeline_mode<synchronous>, transform_indices = @transform_7, window_bounds = array<i64: 1, 32>}, {pipeline_mode = #tpu.pipeline_mode<synchronous>, transform_indices = @transform_8, window_bounds = array<i64: 32, 64>}, {pipeline_mode = #tpu.pipeline_mode<synchronous>, transform_indices = @transform_9, window_bounds = array<i64: 1, 64>}, {pipeline_mode = #tpu.pipeline_mode<synchronous>, transform_indices = @transform_10, window_bounds = array<i64: 64, 32>}, {pipeline_mode = #tpu.pipeline_mode<synchronous>, transform_indices = @transform_11, window_bounds = array<i64: 1, 32>}, {pipeline_mode = #tpu.pipeline_mode<synchronous>, transform_indices = @transform_12, window_bounds = array<i64: 1, 32>}, {pipeline_mode = #tpu.pipeline_mode<synchronous>, transform_indices = @transform_13, window_bounds = array<i64: 1, 32>}, {transform_indices = @transform_14, window_bounds = array<i64: 1, 8, 32>}]} {
    %c0 = arith.constant 0 : index
    %c0_0 = arith.constant 0 : index
    %c0_1 = arith.constant 0 : index
    %0 = vector.load %arg1[%c0, %c0_0, %c0_1] : memref<1x8x32xbf16, #tpu.memory_space<vmem>>, vector<1x8x32xbf16>
    %1 = arith.extf %0 : vector<1x8x32xbf16> to vector<1x8x32xf32>
    %cst = arith.constant 5.65685415 : f32
    %2 = vector.broadcast %cst : f32 to vector<1x8x32xf32>
    %3 = arith.mulf %1, %2 : vector<1x8x32xf32>
    %c0_2 = arith.constant 0 : index
    %c0_3 = arith.constant 0 : index
    %4 = vector.load %arg2[%c0_2, %c0_3] : memref<8x32xf32, #tpu.memory_space<vmem>>, vector<8x32xf32>
    %5 = vector.shape_cast %4 : vector<8x32xf32> to vector<1x8x32xf32>
    %6 = arith.addf %3, %5 : vector<1x8x32xf32>
    %7 = vector.shape_cast %6 : vector<1x8x32xf32> to vector<8x32xf32>
    %8 = arith.truncf %7 : vector<8x32xf32> to vector<8x32xbf16>
    %c0_4 = arith.constant 0 : index
    %c0_5 = arith.constant 0 : index
    %9 = vector.load %arg3[%c0_4, %c0_5] : memref<32x96xbf16, #tpu.memory_space<vmem>>, vector<32x96xbf16>
    %cst_6 = arith.constant dense<0.000000e+00> : vector<8x96xf32>
    %10 = tpu.matmul %8, %9, %cst_6 {dimension_numbers = #tpu.dot_dimension_numbers<[1], [0], [0], [1], [0, 0, 1, 1], [], []>} : vector<8x32xbf16>, vector<32x96xbf16>, vector<8x96xf32> -> vector<8x96xf32>
    %c0_7 = arith.constant 0 : index
    %c0_8 = arith.constant 0 : index
    %11 = vector.load %arg4[%c0_7, %c0_8] : memref<1x96xf32, #tpu.memory_space<vmem>>, vector<1x96xf32>
    %12 = vector.broadcast %11 : vector<1x96xf32> to vector<8x96xf32>
    %13 = arith.addf %10, %12 : vector<8x96xf32>
    %14 = vector.extract_strided_slice %13 {offsets = [0, 0], sizes = [8, 8], strides = [1, 1]} : vector<8x96xf32> to vector<8x8xf32>
    %cst_9 = arith.constant 0.353553385 : f32
    %15 = vector.broadcast %cst_9 : f32 to vector<8x8xf32>
    %16 = arith.mulf %14, %15 : vector<8x8xf32>
    %17 = vector.shape_cast %16 : vector<8x8xf32> to vector<1x8x8xf32>
    %18 = vector.extract_strided_slice %13 {offsets = [0, 32], sizes = [8, 8], strides = [1, 1]} : vector<8x96xf32> to vector<8x8xf32>
    %19 = vector.shape_cast %18 : vector<8x8xf32> to vector<1x8x8xf32>
    %20 = vector.extract_strided_slice %13 {offsets = [0, 64], sizes = [8, 8], strides = [1, 1]} : vector<8x96xf32> to vector<8x8xf32>
    %21 = vector.shape_cast %20 : vector<8x8xf32> to vector<1x8x8xf32>
    %22 = arith.truncf %17 : vector<1x8x8xf32> to vector<1x8x8xbf16>
    %23 = arith.truncf %19 : vector<1x8x8xf32> to vector<1x8x8xbf16>
    "tpu.trace_start"() <{level = 10 : i32, message = "bqd,bkd->bqk"}> : () -> ()
    %cst_10 = arith.constant dense<0.000000e+00> : vector<1x8x8xf32>
    %24 = tpu.matmul %22, %23, %cst_10 {dimension_numbers = #tpu.dot_dimension_numbers<[2], [2], [1], [1], [0, 0, 0, 1, 1, 1], [0], [0]>} : vector<1x8x8xbf16>, vector<1x8x8xbf16>, vector<1x8x8xf32> -> vector<1x8x8xf32>
    "tpu.trace_stop"() : () -> ()
    %cst_11 = arith.constant dense<0xFF800000> : vector<1x8xf32>
    %25 = vector.multi_reduction <maximumf>, %24, %cst_11 [2] : vector<1x8x8xf32> to vector<1x8xf32>
    %26 = vector.shape_cast %25 : vector<1x8xf32> to vector<1x8x1xf32>
    %27 = vector.broadcast %26 : vector<1x8x1xf32> to vector<1x8x8xf32>
    %28 = arith.subf %24, %27 : vector<1x8x8xf32>
    %29 = math.exp %28 : vector<1x8x8xf32>
    %cst_12 = arith.constant dense<0.000000e+00> : vector<1x8xf32>
    %30 = vector.multi_reduction <add>, %29, %cst_12 [2] : vector<1x8x8xf32> to vector<1x8xf32>
    %31 = vector.shape_cast %30 : vector<1x8xf32> to vector<1x8x1xf32>
    %32 = tpu.reciprocal %31 {approx = true} : vector<1x8x1xf32> -> vector<1x8x1xf32>
    %33 = vector.broadcast %32 : vector<1x8x1xf32> to vector<1x8x8xf32>
    %34 = arith.mulf %29, %33 : vector<1x8x8xf32>
    %35 = arith.truncf %34 : vector<1x8x8xf32> to vector<1x8x8xbf16>
    %36 = arith.truncf %21 : vector<1x8x8xf32> to vector<1x8x8xbf16>
    "tpu.trace_start"() <{level = 10 : i32, message = "bqk,bkd->bqd"}> : () -> ()
    %cst_13 = arith.constant dense<0.000000e+00> : vector<1x8x8xf32>
    %37 = tpu.matmul %35, %36, %cst_13 {dimension_numbers = #tpu.dot_dimension_numbers<[2], [1], [1], [2], [0, 0, 0, 1, 1, 2], [0], [0]>} : vector<1x8x8xbf16>, vector<1x8x8xbf16>, vector<1x8x8xf32> -> vector<1x8x8xf32>
    "tpu.trace_stop"() : () -> ()
    %38 = vector.shape_cast %37 : vector<1x8x8xf32> to vector<8x8xf32>
    %39 = arith.truncf %38 : vector<8x8xf32> to vector<8x8xbf16>
    %c0_14 = arith.constant 0 : index
    %c0_15 = arith.constant 0 : index
    %40 = vector.load %arg16[%c0_14, %c0_15] : memref<8x32xbf16, #tpu.memory_space<vmem>>, vector<8x8xbf16>
    tpu.vector_store %arg16[%c0_14, %c0_15], %39 {strides = array<i32>} : memref<8x32xbf16, #tpu.memory_space<vmem>>, vector<8x8xbf16>,
    %41 = vector.extract_strided_slice %13 {offsets = [0, 8], sizes = [8, 8], strides = [1, 1]} : vector<8x96xf32> to vector<8x8xf32>
    %cst_16 = arith.constant 0.353553385 : f32
    %42 = vector.broadcast %cst_16 : f32 to vector<8x8xf32>
    %43 = arith.mulf %41, %42 : vector<8x8xf32>
    %44 = vector.shape_cast %43 : vector<8x8xf32> to vector<1x8x8xf32>
    %45 = vector.extract_strided_slice %13 {offsets = [0, 40], sizes = [8, 8], strides = [1, 1]} : vector<8x96xf32> to vector<8x8xf32>
    %46 = vector.shape_cast %45 : vector<8x8xf32> to vector<1x8x8xf32>
    %47 = vector.extract_strided_slice %13 {offsets = [0, 72], sizes = [8, 8], strides = [1, 1]} : vector<8x96xf32> to vector<8x8xf32>
    %48 = vector.shape_cast %47 : vector<8x8xf32> to vector<1x8x8xf32>
    %49 = arith.truncf %44 : vector<1x8x8xf32> to vector<1x8x8xbf16>
    %50 = arith.truncf %46 : vector<1x8x8xf32> to vector<1x8x8xbf16>
    "tpu.trace_start"() <{level = 10 : i32, message = "bqd,bkd->bqk"}> : () -> ()
    %cst_17 = arith.constant dense<0.000000e+00> : vector<1x8x8xf32>
    %51 = tpu.matmul %49, %50, %cst_17 {dimension_numbers = #tpu.dot_dimension_numbers<[2], [2], [1], [1], [0, 0, 0, 1, 1, 1], [0], [0]>} : vector<1x8x8xbf16>, vector<1x8x8xbf16>, vector<1x8x8xf32> -> vector<1x8x8xf32>
    "tpu.trace_stop"() : () -> ()
    %cst_18 = arith.constant dense<0xFF800000> : vector<1x8xf32>
    %52 = vector.multi_reduction <maximumf>, %51, %cst_18 [2] : vector<1x8x8xf32> to vector<1x8xf32>
    %53 = vector.shape_cast %52 : vector<1x8xf32> to vector<1x8x1xf32>
    %54 = vector.broadcast %53 : vector<1x8x1xf32> to vector<1x8x8xf32>
    %55 = arith.subf %51, %54 : vector<1x8x8xf32>
    %56 = math.exp %55 : vector<1x8x8xf32>
    %cst_19 = arith.constant dense<0.000000e+00> : vector<1x8xf32>
    %57 = vector.multi_reduction <add>, %56, %cst_19 [2] : vector<1x8x8xf32> to vector<1x8xf32>
    %58 = vector.shape_cast %57 : vector<1x8xf32> to vector<1x8x1xf32>
    %59 = tpu.reciprocal %58 {approx = true} : vector<1x8x1xf32> -> vector<1x8x1xf32>
    %60 = vector.broadcast %59 : vector<1x8x1xf32> to vector<1x8x8xf32>
    %61 = arith.mulf %56, %60 : vector<1x8x8xf32>
    %62 = arith.truncf %61 : vector<1x8x8xf32> to vector<1x8x8xbf16>
    %63 = arith.truncf %48 : vector<1x8x8xf32> to vector<1x8x8xbf16>
    "tpu.trace_start"() <{level = 10 : i32, message = "bqk,bkd->bqd"}> : () -> ()
    %cst_20 = arith.constant dense<0.000000e+00> : vector<1x8x8xf32>
    %64 = tpu.matmul %62, %63, %cst_20 {dimension_numbers = #tpu.dot_dimension_numbers<[2], [1], [1], [2], [0, 0, 0, 1, 1, 2], [0], [0]>} : vector<1x8x8xbf16>, vector<1x8x8xbf16>, vector<1x8x8xf32> -> vector<1x8x8xf32>
    "tpu.trace_stop"() : () -> ()
    %65 = vector.shape_cast %64 : vector<1x8x8xf32> to vector<8x8xf32>
    %66 = arith.truncf %65 : vector<8x8xf32> to vector<8x8xbf16>
    %c0_21 = arith.constant 0 : index
    %c8 = arith.constant 8 : index
    %67 = vector.load %arg16[%c0_21, %c8] : memref<8x32xbf16, #tpu.memory_space<vmem>>, vector<8x8xbf16>
    tpu.vector_store %arg16[%c0_21, %c8], %66 {strides = array<i32>} : memref<8x32xbf16, #tpu.memory_space<vmem>>, vector<8x8xbf16>,
    %68 = vector.extract_strided_slice %13 {offsets = [0, 16], sizes = [8, 8], strides = [1, 1]} : vector<8x96xf32> to vector<8x8xf32>
    %cst_22 = arith.constant 0.353553385 : f32
    %69 = vector.broadcast %cst_22 : f32 to vector<8x8xf32>
    %70 = arith.mulf %68, %69 : vector<8x8xf32>
    %71 = vector.shape_cast %70 : vector<8x8xf32> to vector<1x8x8xf32>
    %72 = vector.extract_strided_slice %13 {offsets = [0, 48], sizes = [8, 8], strides = [1, 1]} : vector<8x96xf32> to vector<8x8xf32>
    %73 = vector.shape_cast %72 : vector<8x8xf32> to vector<1x8x8xf32>
    %74 = vector.extract_strided_slice %13 {offsets = [0, 80], sizes = [8, 8], strides = [1, 1]} : vector<8x96xf32> to vector<8x8xf32>
    %75 = vector.shape_cast %74 : vector<8x8xf32> to vector<1x8x8xf32>
    %76 = arith.truncf %71 : vector<1x8x8xf32> to vector<1x8x8xbf16>
    %77 = arith.truncf %73 : vector<1x8x8xf32> to vector<1x8x8xbf16>
    "tpu.trace_start"() <{level = 10 : i32, message = "bqd,bkd->bqk"}> : () -> ()
    %cst_23 = arith.constant dense<0.000000e+00> : vector<1x8x8xf32>
    %78 = tpu.matmul %76, %77, %cst_23 {dimension_numbers = #tpu.dot_dimension_numbers<[2], [2], [1], [1], [0, 0, 0, 1, 1, 1], [0], [0]>} : vector<1x8x8xbf16>, vector<1x8x8xbf16>, vector<1x8x8xf32> -> vector<1x8x8xf32>
    "tpu.trace_stop"() : () -> ()
    %cst_24 = arith.constant dense<0xFF800000> : vector<1x8xf32>
    %79 = vector.multi_reduction <maximumf>, %78, %cst_24 [2] : vector<1x8x8xf32> to vector<1x8xf32>
    %80 = vector.shape_cast %79 : vector<1x8xf32> to vector<1x8x1xf32>
    %81 = vector.broadcast %80 : vector<1x8x1xf32> to vector<1x8x8xf32>
    %82 = arith.subf %78, %81 : vector<1x8x8xf32>
    %83 = math.exp %82 : vector<1x8x8xf32>
    %cst_25 = arith.constant dense<0.000000e+00> : vector<1x8xf32>
    %84 = vector.multi_reduction <add>, %83, %cst_25 [2] : vector<1x8x8xf32> to vector<1x8xf32>
    %85 = vector.shape_cast %84 : vector<1x8xf32> to vector<1x8x1xf32>
    %86 = tpu.reciprocal %85 {approx = true} : vector<1x8x1xf32> -> vector<1x8x1xf32>
    %87 = vector.broadcast %86 : vector<1x8x1xf32> to vector<1x8x8xf32>
    %88 = arith.mulf %83, %87 : vector<1x8x8xf32>
    %89 = arith.truncf %88 : vector<1x8x8xf32> to vector<1x8x8xbf16>
    %90 = arith.truncf %75 : vector<1x8x8xf32> to vector<1x8x8xbf16>
    "tpu.trace_start"() <{level = 10 : i32, message = "bqk,bkd->bqd"}> : () -> ()
    %cst_26 = arith.constant dense<0.000000e+00> : vector<1x8x8xf32>
    %91 = tpu.matmul %89, %90, %cst_26 {dimension_numbers = #tpu.dot_dimension_numbers<[2], [1], [1], [2], [0, 0, 0, 1, 1, 2], [0], [0]>} : vector<1x8x8xbf16>, vector<1x8x8xbf16>, vector<1x8x8xf32> -> vector<1x8x8xf32>
    "tpu.trace_stop"() : () -> ()
    %92 = vector.shape_cast %91 : vector<1x8x8xf32> to vector<8x8xf32>
    %93 = arith.truncf %92 : vector<8x8xf32> to vector<8x8xbf16>
    %c0_27 = arith.constant 0 : index
    %c16 = arith.constant 16 : index
    %94 = vector.load %arg16[%c0_27, %c16] : memref<8x32xbf16, #tpu.memory_space<vmem>>, vector<8x8xbf16>
    tpu.vector_store %arg16[%c0_27, %c16], %93 {strides = array<i32>} : memref<8x32xbf16, #tpu.memory_space<vmem>>, vector<8x8xbf16>,
    %95 = vector.extract_strided_slice %13 {offsets = [0, 24], sizes = [8, 8], strides = [1, 1]} : vector<8x96xf32> to vector<8x8xf32>
    %cst_28 = arith.constant 0.353553385 : f32
    %96 = vector.broadcast %cst_28 : f32 to vector<8x8xf32>
    %97 = arith.mulf %95, %96 : vector<8x8xf32>
    %98 = vector.shape_cast %97 : vector<8x8xf32> to vector<1x8x8xf32>
    %99 = vector.extract_strided_slice %13 {offsets = [0, 56], sizes = [8, 8], strides = [1, 1]} : vector<8x96xf32> to vector<8x8xf32>
    %100 = vector.shape_cast %99 : vector<8x8xf32> to vector<1x8x8xf32>
    %101 = vector.extract_strided_slice %13 {offsets = [0, 88], sizes = [8, 8], strides = [1, 1]} : vector<8x96xf32> to vector<8x8xf32>
    %102 = vector.shape_cast %101 : vector<8x8xf32> to vector<1x8x8xf32>
    %103 = arith.truncf %98 : vector<1x8x8xf32> to vector<1x8x8xbf16>
    %104 = arith.truncf %100 : vector<1x8x8xf32> to vector<1x8x8xbf16>
    "tpu.trace_start"() <{level = 10 : i32, message = "bqd,bkd->bqk"}> : () -> ()
    %cst_29 = arith.constant dense<0.000000e+00> : vector<1x8x8xf32>
    %105 = tpu.matmul %103, %104, %cst_29 {dimension_numbers = #tpu.dot_dimension_numbers<[2], [2], [1], [1], [0, 0, 0, 1, 1, 1], [0], [0]>} : vector<1x8x8xbf16>, vector<1x8x8xbf16>, vector<1x8x8xf32> -> vector<1x8x8xf32>
    "tpu.trace_stop"() : () -> ()
    %cst_30 = arith.constant dense<0xFF800000> : vector<1x8xf32>
    %106 = vector.multi_reduction <maximumf>, %105, %cst_30 [2] : vector<1x8x8xf32> to vector<1x8xf32>
    %107 = vector.shape_cast %106 : vector<1x8xf32> to vector<1x8x1xf32>
    %108 = vector.broadcast %107 : vector<1x8x1xf32> to vector<1x8x8xf32>
    %109 = arith.subf %105, %108 : vector<1x8x8xf32>
    %110 = math.exp %109 : vector<1x8x8xf32>
    %cst_31 = arith.constant dense<0.000000e+00> : vector<1x8xf32>
    %111 = vector.multi_reduction <add>, %110, %cst_31 [2] : vector<1x8x8xf32> to vector<1x8xf32>
    %112 = vector.shape_cast %111 : vector<1x8xf32> to vector<1x8x1xf32>
    %113 = tpu.reciprocal %112 {approx = true} : vector<1x8x1xf32> -> vector<1x8x1xf32>
    %114 = vector.broadcast %113 : vector<1x8x1xf32> to vector<1x8x8xf32>
    %115 = arith.mulf %110, %114 : vector<1x8x8xf32>
    %116 = arith.truncf %115 : vector<1x8x8xf32> to vector<1x8x8xbf16>
    %117 = arith.truncf %102 : vector<1x8x8xf32> to vector<1x8x8xbf16>
    "tpu.trace_start"() <{level = 10 : i32, message = "bqk,bkd->bqd"}> : () -> ()
    %cst_32 = arith.constant dense<0.000000e+00> : vector<1x8x8xf32>
    %118 = tpu.matmul %116, %117, %cst_32 {dimension_numbers = #tpu.dot_dimension_numbers<[2], [1], [1], [2], [0, 0, 0, 1, 1, 2], [0], [0]>} : vector<1x8x8xbf16>, vector<1x8x8xbf16>, vector<1x8x8xf32> -> vector<1x8x8xf32>
    "tpu.trace_stop"() : () -> ()
    %119 = vector.shape_cast %118 : vector<1x8x8xf32> to vector<8x8xf32>
    %120 = arith.truncf %119 : vector<8x8xf32> to vector<8x8xbf16>
    %c0_33 = arith.constant 0 : index
    %c24 = arith.constant 24 : index
    %121 = vector.load %arg16[%c0_33, %c24] : memref<8x32xbf16, #tpu.memory_space<vmem>>, vector<8x8xbf16>
    tpu.vector_store %arg16[%c0_33, %c24], %120 {strides = array<i32>} : memref<8x32xbf16, #tpu.memory_space<vmem>>, vector<8x8xbf16>,
    %c0_34 = arith.constant 0 : index
    %c0_35 = arith.constant 0 : index
    %122 = vector.load %arg16[%c0_34, %c0_35] : memref<8x32xbf16, #tpu.memory_space<vmem>>, vector<8x32xbf16>
    %c0_36 = arith.constant 0 : index
    %c0_37 = arith.constant 0 : index
    %123 = vector.load %arg5[%c0_36, %c0_37] : memref<32x32xbf16, #tpu.memory_space<vmem>>, vector<32x32xbf16>
    %cst_38 = arith.constant dense<0.000000e+00> : vector<8x32xf32>
    %124 = tpu.matmul %122, %123, %cst_38 {dimension_numbers = #tpu.dot_dimension_numbers<[1], [0], [0], [1], [0, 0, 1, 1], [], []>} : vector<8x32xbf16>, vector<32x32xbf16>, vector<8x32xf32> -> vector<8x32xf32>
    %c0_39 = arith.constant 0 : index
    %c0_40 = arith.constant 0 : index
    %125 = vector.load %arg6[%c0_39, %c0_40] : memref<1x32xf32, #tpu.memory_space<vmem>>, vector<1x32xf32>
    %126 = vector.broadcast %125 : vector<1x32xf32> to vector<8x32xf32>
    %127 = arith.addf %124, %126 : vector<8x32xf32>
    %128 = arith.addf %7, %127 : vector<8x32xf32>
    %cst_41 = arith.constant dense<0.000000e+00> : vector<8xf32>
    %129 = vector.multi_reduction <add>, %128, %cst_41 [1] : vector<8x32xf32> to vector<8xf32>
    %130 = vector.shape_cast %129 : vector<8xf32> to vector<8x1xf32>
    %cst_42 = arith.constant 3.200000e+01 : f32
    %131 = vector.broadcast %cst_42 : f32 to vector<8x1xf32>
    %132 = arith.divf %130, %131 : vector<8x1xf32>
    %133 = vector.broadcast %132 : vector<8x1xf32> to vector<8x32xf32>
    %134 = arith.subf %128, %133 : vector<8x32xf32>
    %135 = arith.mulf %134, %134 : vector<8x32xf32>
    %cst_43 = arith.constant dense<0.000000e+00> : vector<8xf32>
    %136 = vector.multi_reduction <add>, %135, %cst_43 [1] : vector<8x32xf32> to vector<8xf32>
    %137 = vector.shape_cast %136 : vector<8xf32> to vector<8x1xf32>
    %cst_44 = arith.constant 3.200000e+01 : f32
    %138 = vector.broadcast %cst_44 : f32 to vector<8x1xf32>
    %139 = arith.divf %137, %138 : vector<8x1xf32>
    %140 = vector.broadcast %132 : vector<8x1xf32> to vector<8x32xf32>
    %141 = arith.subf %128, %140 : vector<8x32xf32>
    %cst_45 = arith.constant 9.99999974E-6 : f32
    %142 = vector.broadcast %cst_45 : f32 to vector<8x1xf32>
    %143 = arith.addf %139, %142 : vector<8x1xf32>
    %144 = math.rsqrt %143 : vector<8x1xf32>
    %145 = vector.broadcast %144 : vector<8x1xf32> to vector<8x32xf32>
    %146 = arith.mulf %141, %145 : vector<8x32xf32>
    %c0_46 = arith.constant 0 : index
    %c0_47 = arith.constant 0 : index
    %147 = vector.load %arg7[%c0_46, %c0_47] : memref<1x32xf32, #tpu.memory_space<vmem>>, vector<1x32xf32>
    %148 = vector.broadcast %147 : vector<1x32xf32> to vector<8x32xf32>
    %149 = arith.mulf %146, %148 : vector<8x32xf32>
    %c0_48 = arith.constant 0 : index
    %c0_49 = arith.constant 0 : index
    %150 = vector.load %arg8[%c0_48, %c0_49] : memref<1x32xf32, #tpu.memory_space<vmem>>, vector<1x32xf32>
    %151 = vector.broadcast %150 : vector<1x32xf32> to vector<8x32xf32>
    %152 = arith.addf %149, %151 : vector<8x32xf32>
    %153 = arith.truncf %152 : vector<8x32xf32> to vector<8x32xbf16>
    %c0_50 = arith.constant 0 : index
    %c0_51 = arith.constant 0 : index
    %154 = vector.load %arg9[%c0_50, %c0_51] : memref<32x64xbf16, #tpu.memory_space<vmem>>, vector<32x64xbf16>
    %cst_52 = arith.constant dense<0.000000e+00> : vector<8x64xf32>
    %155 = tpu.matmul %153, %154, %cst_52 {dimension_numbers = #tpu.dot_dimension_numbers<[1], [0], [0], [1], [0, 0, 1, 1], [], []>} : vector<8x32xbf16>, vector<32x64xbf16>, vector<8x64xf32> -> vector<8x64xf32>
    %c0_53 = arith.constant 0 : index
    %c0_54 = arith.constant 0 : index
    %156 = vector.load %arg10[%c0_53, %c0_54] : memref<1x64xf32, #tpu.memory_space<vmem>>, vector<1x64xf32>
    %157 = vector.broadcast %156 : vector<1x64xf32> to vector<8x64xf32>
    %158 = arith.addf %155, %157 : vector<8x64xf32>
    %cst_55 = arith.constant 0.000000e+00 : f32
    %159 = vector.broadcast %cst_55 : f32 to vector<8x64xf32>
    %160 = arith.maximumf %158, %159 : vector<8x64xf32>
    %161 = arith.truncf %160 : vector<8x64xf32> to vector<8x64xbf16>
    %c0_56 = arith.constant 0 : index
    %c0_57 = arith.constant 0 : index
    %162 = vector.load %arg11[%c0_56, %c0_57] : memref<64x32xbf16, #tpu.memory_space<vmem>>, vector<64x32xbf16>
    %cst_58 = arith.constant dense<0.000000e+00> : vector<8x32xf32>
    %163 = tpu.matmul %161, %162, %cst_58 {dimension_numbers = #tpu.dot_dimension_numbers<[1], [0], [0], [1], [0, 0, 1, 1], [], []>} : vector<8x64xbf16>, vector<64x32xbf16>, vector<8x32xf32> -> vector<8x32xf32>
    %c0_59 = arith.constant 0 : index
    %c0_60 = arith.constant 0 : index
    %164 = vector.load %arg12[%c0_59, %c0_60] : memref<1x32xf32, #tpu.memory_space<vmem>>, vector<1x32xf32>
    %165 = vector.broadcast %164 : vector<1x32xf32> to vector<8x32xf32>
    %166 = arith.addf %163, %165 : vector<8x32xf32>
    %167 = arith.addf %152, %166 : vector<8x32xf32>
    %cst_61 = arith.constant dense<0.000000e+00> : vector<8xf32>
    %168 = vector.multi_reduction <add>, %167, %cst_61 [1] : vector<8x32xf32> to vector<8xf32>
    %169 = vector.shape_cast %168 : vector<8xf32> to vector<8x1xf32>
    %cst_62 = arith.constant 3.200000e+01 : f32
    %170 = vector.broadcast %cst_62 : f32 to vector<8x1xf32>
    %171 = arith.divf %169, %170 : vector<8x1xf32>
    %172 = vector.broadcast %171 : vector<8x1xf32> to vector<8x32xf32>
    %173 = arith.subf %167, %172 : vector<8x32xf32>
    %174 = arith.mulf %173, %173 : vector<8x32xf32>
    %cst_63 = arith.constant dense<0.000000e+00> : vector<8xf32>
    %175 = vector.multi_reduction <add>, %174, %cst_63 [1] : vector<8x32xf32> to vector<8xf32>
    %176 = vector.shape_cast %175 : vector<8xf32> to vector<8x1xf32>
    %cst_64 = arith.constant 3.200000e+01 : f32
    %177 = vector.broadcast %cst_64 : f32 to vector<8x1xf32>
    %178 = arith.divf %176, %177 : vector<8x1xf32>
    %179 = vector.broadcast %171 : vector<8x1xf32> to vector<8x32xf32>
    %180 = arith.subf %167, %179 : vector<8x32xf32>
    %cst_65 = arith.constant 9.99999974E-6 : f32
    %181 = vector.broadcast %cst_65 : f32 to vector<8x1xf32>
    %182 = arith.addf %178, %181 : vector<8x1xf32>
    %183 = math.rsqrt %182 : vector<8x1xf32>
    %184 = vector.broadcast %183 : vector<8x1xf32> to vector<8x32xf32>
    %185 = arith.mulf %180, %184 : vector<8x32xf32>
    %c0_66 = arith.constant 0 : index
    %c0_67 = arith.constant 0 : index
    %186 = vector.load %arg13[%c0_66, %c0_67] : memref<1x32xf32, #tpu.memory_space<vmem>>, vector<1x32xf32>
    %187 = vector.broadcast %186 : vector<1x32xf32> to vector<8x32xf32>
    %188 = arith.mulf %185, %187 : vector<8x32xf32>
    %c0_68 = arith.constant 0 : index
    %c0_69 = arith.constant 0 : index
    %189 = vector.load %arg14[%c0_68, %c0_69] : memref<1x32xf32, #tpu.memory_space<vmem>>, vector<1x32xf32>
    %190 = vector.broadcast %189 : vector<1x32xf32> to vector<8x32xf32>
    %191 = arith.addf %188, %190 : vector<8x32xf32>
    %192 = vector.shape_cast %191 : vector<8x32xf32> to vector<1x8x32xf32>
    %193 = arith.truncf %192 : vector<1x8x32xf32> to vector<1x8x32xbf16>
    %c0_70 = arith.constant 0 : index
    %c0_71 = arith.constant 0 : index
    %c0_72 = arith.constant 0 : index
    %194 = vector.load %arg15[%c0_70, %c0_71, %c0_72] : memref<1x8x32xbf16, #tpu.memory_space<vmem>>, vector<1x8x32xbf16>
    tpu.vector_store %arg15[%c0_70, %c0_71, %c0_72], %193 {strides = array<i32>} : memref<1x8x32xbf16, #tpu.memory_space<vmem>>, vector<1x8x32xbf16>,
    return
  }
  func.func @transform_0(%arg0: i32) -> (i32, i32, i32) {
    %c0_i32 = arith.constant 0 : i32
    %c0_i32_0 = arith.constant 0 : i32
    %c0_i32_1 = arith.constant 0 : i32
    return %arg0, %c0_i32, %c0_i32_0 : i32, i32, i32
  }
  func.func @transform_1(%arg0: i32) -> (i32, i32) {
    %c0_i32 = arith.constant 0 : i32
    %c0_i32_0 = arith.constant 0 : i32
    %c0_i32_1 = arith.constant 0 : i32
    return %c0_i32, %c0_i32_0 : i32, i32
  }
  func.func @transform_2(%arg0: i32) -> (i32, i32) {
    %c0_i32 = arith.constant 0 : i32
    %c0_i32_0 = arith.constant 0 : i32
    %c0_i32_1 = arith.constant 0 : i32
    return %c0_i32, %c0_i32_0 : i32, i32
  }
  func.func @transform_3(%arg0: i32) -> (i32, i32) {
    %c0_i32 = arith.constant 0 : i32
    %c0_i32_0 = arith.constant 0 : i32
    %c0_i32_1 = arith.constant 0 : i32
    return %c0_i32, %c0_i32_0 : i32, i32
  }
  func.func @transform_4(%arg0: i32) -> (i32, i32) {
    %c0_i32 = arith.constant 0 : i32
    %c0_i32_0 = arith.constant 0 : i32
    %c0_i32_1 = arith.constant 0 : i32
    return %c0_i32, %c0_i32_0 : i32, i32
  }
  func.func @transform_5(%arg0: i32) -> (i32, i32) {
    %c0_i32 = arith.constant 0 : i32
    %c0_i32_0 = arith.constant 0 : i32
    %c0_i32_1 = arith.constant 0 : i32
    return %c0_i32, %c0_i32_0 : i32, i32
  }
  func.func @transform_6(%arg0: i32) -> (i32, i32) {
    %c0_i32 = arith.constant 0 : i32
    %c0_i32_0 = arith.constant 0 : i32
    %c0_i32_1 = arith.constant 0 : i32
    return %c0_i32, %c0_i32_0 : i32, i32
  }
  func.func @transform_7(%arg0: i32) -> (i32, i32) {
    %c0_i32 = arith.constant 0 : i32
    %c0_i32_0 = arith.constant 0 : i32
    %c0_i32_1 = arith.constant 0 : i32
    return %c0_i32, %c0_i32_0 : i32, i32
  }
  func.func @transform_8(%arg0: i32) -> (i32, i32) {
    %c0_i32 = arith.constant 0 : i32
    %c0_i32_0 = arith.constant 0 : i32
    %c0_i32_1 = arith.constant 0 : i32
    return %c0_i32, %c0_i32_0 : i32, i32
  }
  func.func @transform_9(%arg0: i32) -> (i32, i32) {
    %c0_i32 = arith.constant 0 : i32
    %c0_i32_0 = arith.constant 0 : i32
    %c0_i32_1 = arith.constant 0 : i32
    return %c0_i32, %c0_i32_0 : i32, i32
  }
  func.func @transform_10(%arg0: i32) -> (i32, i32) {
    %c0_i32 = arith.constant 0 : i32
    %c0_i32_0 = arith.constant 0 : i32
    %c0_i32_1 = arith.constant 0 : i32
    return %c0_i32, %c0_i32_0 : i32, i32
  }
  func.func @transform_11(%arg0: i32) -> (i32, i32) {
    %c0_i32 = arith.constant 0 : i32
    %c0_i32_0 = arith.constant 0 : i32
    %c0_i32_1 = arith.constant 0 : i32
    return %c0_i32, %c0_i32_0 : i32, i32
  }
  func.func @transform_12(%arg0: i32) -> (i32, i32) {
    %c0_i32 = arith.constant 0 : i32
    %c0_i32_0 = arith.constant 0 : i32
    %c0_i32_1 = arith.constant 0 : i32
    return %c0_i32, %c0_i32_0 : i32, i32
  }
  func.func @transform_13(%arg0: i32) -> (i32, i32) {
    %c0_i32 = arith.constant 0 : i32
    %c0_i32_0 = arith.constant 0 : i32
    %c0_i32_1 = arith.constant 0 : i32
    return %c0_i32, %c0_i32_0 : i32, i32
  }
  func.func @transform_14(%arg0: i32) -> (i32, i32, i32) {
    %c0_i32 = arith.constant 0 : i32
    %c0_i32_0 = arith.constant 0 : i32
    %c0_i32_1 = arith.constant 0 : i32
    return %arg0, %c0_i32, %c0_i32_0 : i32, i32, i32
  }
}

</mosaic_0001>

<bundles_post_ra>
// kernel: tpu_custom_call.1
= control target key start
LH: loop header
LB: loop body
LE: loop exit
PB: predicated region body
PF: predicated region fallthrough
CT: control target
= control target key end

     0   :  { %s2430_s0 = inlined_call_operand.hbm [shape: bf16[2,8,32], index: 0, kind: input, shape index: {}]   ;;  %s2431_s1 = inlined_call_operand.hbm [shape: f32[8,32], index: 1, kind: input, shape index: {}]   ;;  %s2432_s2 = inlined_call_operand.vmem [shape: bf16[32,96], index: 2, kind: input, shape index: {}]   ;;  %s2433_s3 = inlined_call_operand.vmem [shape: f32[1,96], index: 3, kind: input, shape index: {}]   ;;  %s2434_s4 = inlined_call_operand.vmem [shape: bf16[32,32], index: 4, kind: input, shape index: {}]   ;;  %s2435_s5 = inlined_call_operand.vmem [shape: f32[1,32], index: 5, kind: input, shape index: {}]   ;;  %s2436_s6 = inlined_call_operand.hbm [shape: f32[1,32], index: 6, kind: input, shape index: {}]   ;;  %s2437_s7 = inlined_call_operand.hbm [shape: f32[1,32], index: 7, kind: input, shape index: {}]   ;;  %s2438_s8 = inlined_call_operand.vmem [shape: bf16[32,64], index: 8, kind: input, shape index: {}]   ;;  %s2439_s9 = inlined_call_operand.hbm [shape: f32[1,64], index: 9, kind: input, shape index: {}]   ;;  %s2440_s10 = inlined_call_operand.vmem [shape: bf16[64,32], index: 10, kind: input, shape index: {}]   ;;  %s2441_s11 = inlined_call_operand.vmem [shape: f32[1,32], index: 11, kind: input, shape index: {}]   ;;  %s2442_s12 = inlined_call_operand.vmem [shape: f32[1,32], index: 12, kind: input, shape index: {}]   ;;  %s2443_s13 = inlined_call_operand.vmem [shape: f32[1,32], index: 13, kind: input, shape index: {}]   ;;  %s2444_s14 = inlined_call_operand.hbm [shape: bf16[2,8,32], index: 14, kind: output, shape index: {}]  }
   0x1   :  { %2454 = sst [smem:[#allocation21_spill]] %s2431_s1 }
   0x2   :  { %2455 = sst [smem:[#allocation22_spill]] %s2436_s6 }
   0x3   :  { %2456 = sst [smem:[#allocation23_spill]] %s2437_s7 }
   0x4   :  { %2457 = sst [smem:[#allocation24_spill]] %s2439_s9 }
   0x5   :  { %2458 = sst [smem:[#allocation25_spill]] %s2444_s14 }
   0x6   :  { %19 = vsyncpa [#allocation4], 0 }
   0x7   :  { %21 = vsyncpa [#allocation4 + $0x1], 0 }
   0x8   :  { %22 = vsyncpa [#allocation7], 0 }
   0x9   :  { %23 = vsyncpa [#allocation10], 0 }
   0xa   :  { %24 = vsyncpa [#allocation5], 0 }
   0xb   :  { %26 = vsyncpa [#allocation5 + $0x1], 0  ;;  %s2093_s29 = smov 0   ;;  %s2095_s30 = smov 0  }
   0xc   :  { %s2097_s15 = smov 0   ;;  %s2099_s16 = smov 0  }
   0xd LB: > { %2459 = sst [smem:[#allocation17_spill]] %s1990_s15  ;;  %s1996_s17 = smov [#allocation6]   ;;  %s1994_s16 = sphi %s2099_s16, %s2486_s16   ;;  %s1990_s15 = sphi %s2097_s15, %s2488_s15   ;;  %s1986_s30 = sphi %s2095_s30, %s2490_s30   ;;  %s1982_s29 = sphi %s2093_s29, %s2489_s29  }
   0xe   : > { %2460 = sst [smem:[#allocation18_spill]] %s1994_s16  ;;  %s375_s18 = sshll.u32 %s1996_s17, 4  ;;  %s376_s18 = int_to_ptr.vmem [resolvable:$true] %s375_s18 }
   0xf   : > { %s2114_s19 = sadd.s32 4294967295, %s1994_s16   ;;  %p1488_p0 = scmp.ge.s32.totalorder %s1994_s16, 1 }
  0x10   : > { %p2445_p1 = scmp.eq.s32.totalorder %s2114_s19, 0  ;;  %p362_p2 = scmp.lt.s32.totalorder %s1994_s16, 3 }
  0x11   : > { %s1997_s21 = smov [#allocation9]   ;;  %s1998_s23 = smov [#allocation8]  }
  0x12   : > { %p2119_p3 = pnand %p1488_p0, %p362_p2  ;;  %s409_s22 = sshll.u32 %s1997_s21, 4  ;;  %s410_s22 = int_to_ptr.vmem [resolvable:$true] %s409_s22 }
  0x13   : > { %s398_s24 = sshll.u32 %s1998_s23, 4  ;;  %s1999_s26 = smov [#allocation11]   ;;  %s2132_s24 = int_to_ptr.vmem [resolvable:$true] %s398_s24 }
  0x14   : > { %s2461_s20 = scalar_select %p2119_p3, 1, 0 }
  0x15   : > { %p1677_p5 = pneg %p2119_p3  ;;  %s2134_s27 = sshll.u32 %s1999_s26, 4  ;;  %s424_s27 = int_to_ptr.vmem [resolvable:$true] %s2134_s27 }
  0x16   : > { %s1801_s28 = scalar_lea.vmem %s376_s18, 128  ;;  %p1809_p11 = scmp.lt.s32.totalorder %s376_s18, %s376_s18 }
  0x17   : > { %p2128_p6 = pnand %p1677_p5, %p2445_p1  ;;  %p1802_p8 = scmp.ne.s32.totalorder %s376_s18, %s1801_s28 }
  0x18   : > { %p1810_p12 = scmp.lt.s32.totalorder %s1801_s28, %s1801_s28 }
  0x19   : > { %p1792_p7 = pneg %p2128_p6 }
  0x1a   : > { %p1811_p13 = por %p1810_p12, %p1809_p11 }
  0x1b   : > { %p1804_p9 = pnand %p1802_p8, %p1792_p7 }
  0x1d   : > { %p1805_p10 = pneg %p1804_p9 }
  0x1f   : > { %p1812_p0 = pnand %p1811_p13, %p1805_p10 }
  0x21   : > { %1815 = shalt.err (!%p1812_p0)
}
  0x22   : > { %s2463_s1 = sld [smem:[#allocation21_spill]]  ;;  %s1827_s23 = scalar_lea.vmem %s410_s22, 16 }
  0x23   : > { %p1828_p2 = scmp.ne.s32.totalorder %s410_s22, %s1827_s23  ;;  %s1834_s26 = scalar_lea.vmem %s410_s22, 32 }
  0x24   : > { %p1835_p8 = scmp.lt.s32.totalorder %s410_s22, %s410_s22  ;;  %p1836_p9 = scmp.lt.s32.totalorder %s1834_s26, %s1827_s23 }
  0x25   : > { %p1830_p5 = pnand %p1828_p2, %p1792_p7 }
  0x26   : > { %p1837_p1 = por %p1836_p9, %p1835_p8 }
  0x27   : > { %p1831_p4 = pneg %p1830_p5 }
  0x28   : > { %1680 = dma.hbm_to_vmem [thread:$0]  (!%p2128_p6), %s2463_s1, 128, %s376_s18, [#allocation7]  }
  0x29   : > { %p1838_p11 = pnand %p1837_p1, %p1831_p4 }
  0x2b   : > { %1841 = shalt.err (!%p1838_p11)
}
  0x2c   : > { %s2464_s7 = sld [smem:[#allocation23_spill]]  ;;  %s1853_s18 = scalar_lea.vmem %s2132_s24, 16 }
  0x2d   : > { %p1854_p10 = scmp.ne.s32.totalorder %s2132_s24, %s1853_s18  ;;  %s1860_s17 = scalar_lea.vmem %s2132_s24, 32 }
  0x2e   : > { %p1861_p1 = scmp.lt.s32.totalorder %s2132_s24, %s2132_s24  ;;  %p1862_p4 = scmp.lt.s32.totalorder %s1860_s17, %s1853_s18 }
  0x2f   : > { %p1856_p12 = pnand %p1854_p10, %p1792_p7 }
  0x30   : > { %p1863_p0 = por %p1862_p4, %p1861_p1 }
  0x31   : > { %p1857_p13 = pneg %p1856_p12 }
  0x32   : > { %1686 = dma.hbm_to_vmem [thread:$0]  (!%p2128_p6), %s2464_s7, 16, %s410_s22, [#allocation10]  }
  0x33   : > { %p1864_p2 = pnand %p1863_p0, %p1857_p13 }
  0x35   : > { %1867 = shalt.err (!%p1864_p2)
}
  0x36   : > { %s2465_s6 = sld [smem:[#allocation22_spill]]  ;;  %s1879_s22 = scalar_lea.vmem %s424_s27, 16 }
  0x37   : > { %p1880_p5 = scmp.ne.s32.totalorder %s424_s27, %s1879_s22  ;;  %s1886_s23 = scalar_lea.vmem %s424_s27, 32 }
  0x38   : > { %p1887_p11 = scmp.lt.s32.totalorder %s424_s27, %s424_s27  ;;  %p1888_p10 = scmp.lt.s32.totalorder %s1886_s23, %s1879_s22 }
  0x39   : > { %p1882_p8 = pnand %p1880_p5, %p1792_p7 }
  0x3a   : > { %p1889_p12 = por %p1888_p10, %p1887_p11 }
  0x3b   : > { %p1883_p9 = pneg %p1882_p8 }
  0x3c   : > { %1683 = dma.hbm_to_vmem [thread:$0]  (!%p2128_p6), %s2465_s6, 16, %s2132_s24, [#allocation7]  }
  0x3d   : > { %p1890_p13 = pnand %p1889_p12, %p1883_p9 }
  0x3f   : > { %1893 = shalt.err (!%p1890_p13)
}
  0x40   : > { %s2466_s9 = sld [smem:[#allocation24_spill]]  ;;  %s1487_s24 = sadd.s32 4294967294, %s1994_s16  }
  0x41   : > { %s2179_s25 = sadd.s32 1, %s1994_s16   ;;  %s39_s17 = sadd.s32 1, %s1990_s15 }
  0x42   : > { %2467 = sst [smem:[#allocation19_spill]] %s2179_s25  ;;  %s36_s18 = ssub.s32 %s1994_s16, %s2179_s25 }
  0x43   : > { %p37_p7 = scmp.eq.s32.totalorder %s36_s18, 0  ;;  %p46_p1 = scmp.ne.s32.totalorder %s1990_s15, %s1986_s30 }
  0x44   : > { %p47_p4 = scmp.eq.s32.totalorder %s1994_s16, 0  ;;  %p52_p0 = scmp.ne.s32.totalorder %s1986_s30, %s1982_s29 }
  0x45   : > { %s2190_s14 = scalar_select %p37_p7, %s1990_s15, %s39_s17  }
  0x46   : > { %1689 = dma.hbm_to_vmem [thread:$0]  (!%p2128_p6), %s2466_s9, 16, %s424_s27, [#allocation10]  }
  0x47   : > { %2468 = sst [smem:[#allocation20_spill]] %s2190_s14  ;;  %p2192_p2 = por %p47_p4, %p46_p1 }
  0x48   : > { %p2470_p5 = scmp.eq.s32.totalorder %s2114_s19, 0  ;;  %p349_p8 = scmp.eq.s32.totalorder %s2114_s19, 1 }
  0x49   : > { %p355_p9 = scmp.eq.s32.totalorder %s1487_s24, 1  ;;  %p1702_p11 = scmp.lt.s32.totalorder %s1994_s16, 2 }
  0x4a   : > { %p2198_p6 = por %p2470_p5, %p52_p0  ;;  %s446_s22 = sand.u32 1, %s1990_s15  }
  0x4b   : > { %p2205_p10 = por %p349_p8, %p46_p1  ;;  %p2209_p12 = por %p355_p9, %p52_p0 }
  0x4c   : > { %s2471_s27 = scalar_select %p2198_p6, 1, 0 }
  0x4d   : > { %s2472_s23 = scalar_select %p2205_p10, 1, 0 }
  0x4e   : > { %s2473_s26 = scalar_select %p2209_p12, 1, 0 }
  0x4f   : > { %s1494_s28 = sshll.u32 %s446_s22, 2  ;;  %s1495_s18 = sshll.u32 %s1994_s16, 6 }
  0x50   : > { %s2217_s6 = scalar_lea.hbm %s2430_s0, %s1495_s18  ;;  %s450_s24 = scalar_lea.vmem [#allocation3], %s1494_s28 }
  0x51   : > { %s457_s7 = sshll.u32 %s450_s24, 4  ;;  %p2221_p13 = pnand %p1702_p11, %p2192_p2  ;;  %s458_s7 = int_to_ptr.vmem [resolvable:$true] %s457_s7 }
  0x52   : > { %s447_s14 = scalar_lea.sflag [#allocation4], %s446_s22  ;;  %s1894_s15 = scalar_lea.hbm %s2217_s6, 64 }
  0x53   : > { %p1895_p7 = scmp.ne.s32.totalorder %s2217_s6, %s1894_s15  ;;  %p1896_p1 = pneg %p2221_p13 }
  0x54   : > { %s1899_s17 = scalar_lea.hbm %s2430_s0, 128  ;;  %p1900_p5 = scmp.lt.s32.totalorder %s2217_s6, %s2430_s0 }
  0x55   : > { %p1897_p4 = pnand %p1896_p1, %p1895_p7  ;;  %p1901_p2 = scmp.lt.s32.totalorder %s1899_s17, %s1894_s15 }
  0x57   : > { %p1898_p0 = pneg %p1897_p4  ;;  %p1902_p8 = por %p1901_p2, %p1900_p5 }
  0x59   : > { %p1903_p9 = pnand %p1902_p8, %p1898_p0 }
  0x5b   : > { %1906 = shalt.err (!%p1903_p9)
}
  0x5c   : > { %s1907_s21 = scalar_lea.vmem %s458_s7, 64  ;;  %s2000_s22 = smov [#allocation3]  }
  0x5d   : > { %p1908_p11 = scmp.ne.s32.totalorder %s458_s7, %s1907_s21  ;;  %s1912_s25 = sshll.u32 %s2000_s22, 4  ;;  %s1913_s25 = int_to_ptr.vmem [resolvable:$false] %s1912_s25 }
  0x5e   : > { %s1914_s16 = scalar_lea.vmem %s1913_s25, 128  ;;  %p1915_p7 = scmp.lt.s32.totalorder %s458_s7, %s1913_s25 }
  0x5f   : > { %p1910_p12 = pnand %p1908_p11, %p1896_p1  ;;  %p1916_p4 = scmp.lt.s32.totalorder %s1914_s16, %s1907_s21 }
  0x61   : > { %p1911_p10 = pneg %p1910_p12  ;;  %p1917_p6 = por %p1916_p4, %p1915_p7 }
  0x63   : > { %p1918_p3 = pnand %p1917_p6, %p1911_p10 }
  0x65   : > { %1921 = shalt.err (!%p1918_p3)
}
  0x66   : > { %1693 = dma.hbm_to_vmem [thread:$0]  (!%p2221_p13), %s2217_s6, 64, %s458_s7, %s447_s14  }
  0x67   : > { %p2475_p0 = scmp.ne.s32.totalorder %s2461_s20, 0 }
  0x68   : > { %s2242_s15 = sand.u32 (!%p2475_p0), 1, %s1986_s30   ;;  %p2476_p6 = scmp.ne.s32.totalorder (!%p2475_p0), %s2471_s27, 0 }
  0x69   : > { %466 = sbr.rel (%p2475_p0) target bundleno = 2559 (0x9ff), region = 76  ;;  %s1497_s1 = sshll.u32 (!%p2475_p0), %s2242_s15, 2 }
  0x6a   : > { %s469_s25 = scalar_lea.sflag (!%p2475_p0), [#allocation4], %s2242_s15  ;;  %s472_s16 = scalar_lea.vmem (!%p2475_p0), [#allocation3], %s1497_s1 }
  0x6e   : > { %1965 = dma.done.wait (%p2476_p6), %s469_s25, 64  }
  0x6f   : > { %1967 = vsyncadd (%p2476_p6), %s469_s25, 4294967232  ;;  %p2477_p3 = scmp.eq.s32.totalorder %s2114_s19, 0 }
  0x71   : > { %1969 = dma.done.wait (%p2477_p3), [#allocation7], 144   ;;  %p2478_p10 = pmov %p2477_p3 }
  0x72   : > { %p2479_p12 = pmov %p2477_p3 }
  0x73   : > { %1971 = vsyncadd (%p2478_p10), [#allocation7], 4294967152 }
  0x74   : > { %1973 = dma.done.wait (%p2479_p12), [#allocation10], 32   ;;  %p2480_p13 = pmov %p2477_p3 }
  0x75   : > { %v2001_v0 = vmov 0.0   ;;  %vm2002_vm0 = vmmov 0   ;;  %v1760_v1 = vld [vmem:[%s2432_s2 + $0x8] sm:$0xff]   ;;  %v1761_v2 = vld [vmem:[%s2432_s2] sm:$0xff]   ;;  %vm563_vm1 = vcmask 261120   ;;  %s2003_s18 = smov 96  }
  0x76   : > { %1975 = vsyncadd (%p2480_p13), [#allocation10], 4294967264  ;;  %1573 = vmatprep.subr.bf16.mxu0 %v2001_v0  ;;  %1577 = vmatprep.mubr.msk.bf16.mxu0 %vm2002_vm0, %v2001_v0  ;;  %v534_v3 = vld [vmem:[%s472_s16] sm:$0xf]  ;;  %v537_v4 = vld [vmem:[#allocation6] sm:$0xff]  ;;  %s2004_s17 = smov 120  }
  0x77   : > { %1581 = vmatprep.subr.bf16.mxu1 %v2001_v0  ;;  %1583 = vmatprep.mubr.msk.bf16.mxu1 %vm2002_vm0, %v2001_v0  ;;  %v535_v5 = vunpack.c.l.bf16 %v534_v3  ;;  %v1503_v9 = vld [vmem:[%s2433_s3] ss:$0 sm:$0xff]  ;;  %s2005_s28 = smov 88   ;;  %s2006_s24 = smov 80   ;;  %vm613_vm2 = vcmask 64512   ;;  %vm677_vm3 = vcmask 1043456  }
  0x78   : > { %1574 = vmatpush3.bf16.msra.mxu0 %v1760_v1  ;;  %s2007_s21 = smov 112   ;;  %s2008_s22 = smov 72   ;;  %vm722_vm4 = vcmask 60416   ;;  %vm842_vm5 = vcmask 126016   ;;  %vm961_vm6 = vcmask 191616   ;;  %vm1080_vm7 = vcmask 257216  }
  0x79   : > { %1575 = vmatprep.subr.bf16.mxu0 %v2001_v0  ;;  %v536_v6 = vmul.f32 5.656854, %v535_v5  ;;  %s2009_s25 = smov 104   ;;  %s2010_s16 = smov 56   ;;  %vm1288_vm8 = vcmask 523264   ;;  %vm1363_vm9 = vcmask 257024  }
  0x7a   : > { %s2011_s6 = smov 64   ;;  %s2012_s7 = smov 40  }
  0x7b   : > { %v2273_v7 = vadd.f32 %v537_v4, %v536_v6  ;;  %s2013_s9 = smov 48   ;;  %s2014_s20 = smov 8  }
  0x7c   : > { %1576 = vmatpush3.bf16.msra.mxu0 %v1761_v2  ;;  %p2482_p5 = scmp.ne.s32.totalorder %s2472_s23, 0 }
  0x7d   : > { %1587 = vmatprep.subr.bf16.mxu0 %v2001_v0  ;;  %v539_v8 = vpack.c.bf16 %v2273_v7, %v2273_v7 }
  0x7f   : > { %1578 = vmatmul.mubr.msk.bf16.vlgmr.msra.gmra.mxu0 %vm563_vm1, %v539_v8 }
  0x80   : > { %1589 = vmatprep.mubr.msk.bf16.mxu0 %vm2002_vm0, %v2001_v0 }
 0x13f   : > { %v601_v10 = vpop.f32.mrf.mxu0 }
 0x140   : > { %v602_v11 = vadd.f32 %v1503_v9, %v601_v10 }
 0x141   : > { %v1579_v12 = vpop.f32.mrf.mxu0 }
 0x142   : > { %v607_v13 = vmul.f32 0.35355338, %v602_v11  ;;  %v2284_v14 = vpack.c.bf16 %v602_v11, %v602_v11 }
 0x143   : > { %v604_v15 = vpop.f32.mrf.mxu0 }
 0x144   : > { %v608_v16 = vpack.c.bf16 %v607_v13, %v607_v13  ;;  %611 = vrot.lane.b32.xlu0 %v2284_v14, %s2003_s18 }
 0x145   : > { %v1580_v17 = vpop.f32.mrf.mxu0 }
 0x146   : > { %725 = vrot.lane.b32.xlu1 %v608_v16, %s2004_s17  ;;  %s2481_s17 = sld [smem:[#allocation25_spill]] }
 0x148   : > { %727 = vrot.lane.b32.xlu0 %v2284_v14, %s2005_s28  ;;  %s2015_s28 = smov 16  }
 0x14a   : > { %846 = vrot.lane.b32.xlu1 %v2284_v14, %s2006_s24  ;;  %s2016_s24 = smov 24  }
 0x14c   : > { %844 = vrot.lane.b32.xlu0 %v608_v16, %s2007_s21 }
 0x14e   : > { %965 = vrot.lane.b32.xlu1 %v2284_v14, %s2008_s22  ;;  %s2017_s22 = smov [#allocation12]  }
 0x150   : > { %963 = vrot.lane.b32.xlu0 %v608_v16, %s2009_s25 }
 0x1b6   : > { %v612_v18 = vpop.permute.xlu0 %611 }
 0x1b7   : > { %v618_v19 = vsel %vm613_vm2, %v612_v18, 0 }
 0x1b8   : > { %1582 = vmatpush3.bf16.xpose.msra.mxu1 %v618_v19  ;;  %v726_v21 = vpop.permute.xlu1 %725 }
 0x1b9   : > { %1593 = vmatprep.subr.bf16.mxu1 %v2001_v0 }
 0x1ba   : > { %v728_v20 = vpop.permute.xlu0 %727 }
 0x1bb   : > { %v733_v22 = vsel %vm613_vm2, %v728_v20, 0 }
 0x1bc   : > { %v847_v23 = vpop.permute.xlu1 %846 }
 0x1bd   : > { %v852_v24 = vsel %vm613_vm2, %v847_v23, 0 }
 0x1be   : > { %v845_v26 = vpop.permute.xlu0 %844 }
 0x1bf   : > { %1584 = vmatmul.mubr.msk.bf16.vlgmr.msra.gmra.mxu1 %vm613_vm2, %v608_v16 }
 0x1c0   : > { %1594 = vmatpush3.bf16.xpose.msra.mxu1 %v733_v22  ;;  %1595 = vmatprep.mubr.msk.bf16.mxu1 %vm2002_vm0, %v2001_v0  ;;  %v966_v25 = vpop.permute.xlu1 %965 }
 0x1c1   : > { %1605 = vmatprep.subr.bf16.mxu1 %v2001_v0  ;;  %v971_v27 = vsel %vm613_vm2, %v966_v25, 0 }
 0x1c2   : > { %v964_v28 = vpop.permute.xlu0 %963 }
 0x1c7   : > { %1596 = vmatmul.mubr.msk.bf16.vlgmr.msra.gmra.mxu1 %vm613_vm2, %v726_v21 }
 0x1c8   : > { %1606 = vmatpush3.bf16.xpose.msra.mxu1 %v852_v24  ;;  %1607 = vmatprep.mubr.msk.bf16.mxu1 %vm2002_vm0, %v2001_v0 }
 0x1c9   : > { %1617 = vmatprep.subr.bf16.mxu1 %v2001_v0 }
 0x1cf   : > { %1608 = vmatmul.mubr.msk.bf16.vlgmr.msra.gmra.mxu1 %vm613_vm2, %v845_v26 }
 0x1d0   : > { %1618 = vmatpush3.bf16.xpose.msra.mxu1 %v971_v27  ;;  %1619 = vmatprep.mubr.msk.bf16.mxu1 %vm2002_vm0, %v2001_v0 }
 0x1d1   : > { %1629 = vmatprep.subr.bf16.mxu1 %v2001_v0 }
 0x1d7   : > { %1620 = vmatmul.mubr.msk.bf16.vlgmr.msra.gmra.mxu1 %vm613_vm2, %v964_v28 }
 0x1d8   : > { %1633 = vmatprep.mubr.msk.bf16.mxu1 %vm2002_vm0, %v2001_v0 }
 0x27f   : > { %v654_v29 = vpop.f32.mrf.mxu1 }
 0x280   : > { %v660_v30 = vsel %vm613_vm2, %v654_v29, -inf }
 0x281   : > { %661 = vmax.xlane.f32.xlu1 %v660_v30  ;;  %v1585_v31 = vpop.f32.mrf.mxu1 }
 0x283   : > { %v657_v32 = vpop.f32.mrf.mxu1 }
 0x285   : > { %v1586_v33 = vpop.f32.mrf.mxu1 }
 0x287   : > { %v769_v34 = vpop.f32.mrf.mxu1 }
 0x288   : > { %v775_v35 = vsel %vm613_vm2, %v769_v34, -inf }
 0x289   : > { %776 = vmax.xlane.f32.xlu0 %v775_v35  ;;  %v1597_v36 = vpop.f32.mrf.mxu1 }
 0x28b   : > { %v772_v37 = vpop.f32.mrf.mxu1 }
 0x28d   : > { %v1598_v38 = vpop.f32.mrf.mxu1 }
 0x28f   : > { %v888_v39 = vpop.f32.mrf.mxu1 }
 0x290   : > { %v894_v40 = vsel %vm613_vm2, %v888_v39, -inf }
 0x291   : > { %895 = vmax.xlane.f32.xlu0 %v894_v40  ;;  %v1609_v41 = vpop.f32.mrf.mxu1 }
 0x292   : > { %v1762_v41 = vld [vmem:[%s2434_s4 + $0x8] sm:$0xff]  }
 0x293   : > { %v891_v42 = vpop.f32.mrf.mxu1  ;;  %1630 = vmatpush3.bf16.msra.mxu1 %v1762_v41 }
 0x294   : > { %1631 = vmatprep.subr.bf16.mxu1 %v2001_v0 }
 0x295   : > { %v1610_v43 = vpop.f32.mrf.mxu1 }
 0x297   : > { %v1007_v44 = vpop.f32.mrf.mxu1 }
 0x298   : > { %v1013_v45 = vsel %vm613_vm2, %v1007_v44, -inf }
 0x299   : > { %1014 = vmax.xlane.f32.xlu1 %v1013_v45  ;;  %v1621_v46 = vpop.f32.mrf.mxu1 }
 0x29b   : > { %v1010_v47 = vpop.f32.mrf.mxu1 }
 0x29d   : > { %v1622_v48 = vpop.f32.mrf.mxu1 }
 0x30a   : > { %v662_v49 = vpop.xlane.xlu1 %661 }
 0x30b   : > { %v663_v50 = vsub.f32 %v654_v29, %v662_v49 }
 0x30d   : > { %v664_v51 = vmul.f32 1.442695, %v663_v50 }
 0x30f   : > { %1770 = vpow2.f32 %v664_v51 }
 0x312   : > { %v777_v52 = vpop.xlane.xlu0 %776 }
 0x313   : > { %v778_v53 = vsub.f32 %v769_v34, %v777_v52 }
 0x315   : > { %v779_v54 = vmul.f32 1.442695, %v778_v53 }
 0x317   : > { %1772 = vpow2.f32 %v779_v54 }
 0x31a   : > { %v896_v55 = vpop.xlane.xlu0 %895 }
 0x31b   : > { %v897_v56 = vsub.f32 %v888_v39, %v896_v55 }
 0x31c   : > { %v1771_v57 = vpop.eup %1770 }
 0x31d   : > { %v898_v58 = vmul.f32 1.442695, %v897_v56  ;;  %v666_v59 = vsel %vm613_vm2, %v1771_v57, 0.0 }
 0x31e   : > { %667 = vadd.xlane.f32.xlu0 %v666_v59 }
 0x31f   : > { %1774 = vpow2.f32 %v898_v58 }
 0x322   : > { %v1015_v1 = vpop.xlane.xlu1 %1014 }
 0x323   : > { %v1016_v2 = vsub.f32 %v1007_v44, %v1015_v1  ;;  %v1763_v44 = vld [vmem:[%s2434_s4] sm:$0xff]  }
 0x324   : > { %v1773_v60 = vpop.eup %1772  ;;  %1632 = vmatpush3.bf16.msra.mxu1 %v1763_v44 }
 0x325   : > { %v781_v61 = vsel %vm613_vm2, %v1773_v60, 0.0  ;;  %v1017_v3 = vmul.f32 1.442695, %v1016_v2  ;;  %1645 = vmatprep.subr.bf16.mxu1 %v2001_v0 }
 0x326   : > { %782 = vadd.xlane.f32.xlu1 %v781_v61 }
 0x327   : > { %1776 = vpow2.f32 %v1017_v3 }
 0x32c   : > { %v1775_v62 = vpop.eup %1774 }
 0x32d   : > { %v900_v63 = vsel %vm613_vm2, %v1775_v62, 0.0 }
 0x32e   : > { %901 = vadd.xlane.f32.xlu0 %v900_v63 }
 0x334   : > { %v1777_v4 = vpop.eup %1776 }
 0x335   : > { %v1019_v5 = vsel %vm613_vm2, %v1777_v4, 0.0 }
 0x337   : > { %787 = vrot.lane.b32.xlu1 %v2284_v14, %s2010_s16 }
 0x344   : > { %672 = vrot.lane.b32.xlu0 %v2284_v14, %s2011_s6 }
 0x348   : > { %1025 = vrot.lane.b32.xlu0 %v2284_v14, %s2012_s7 }
 0x35b   : > { %1020 = vadd.xlane.f32.xlu1 %v1019_v5 }
 0x36c   : > { %906 = vrot.lane.b32.xlu1 %v2284_v14, %s2013_s9  ;;  %s1537_s9 = sshll.u32 %s2114_s19, 6  ;;  %s1926_s19 = sshll.u32 %s2017_s22, 4  ;;  %s1927_s19 = int_to_ptr.vmem [resolvable:$false] %s1926_s19 }
 0x3a7   : > { %v668_v6 = vpop.xlane.xlu0 %667 }
 0x3a8   : > { %1778 = vrcp.f32 %v668_v6 }
 0x3af   : > { %v783_v8 = vpop.xlane.xlu1 %782 }
 0x3b0   : > { %1780 = vrcp.f32 %v783_v8  ;;  %v1764_v8 = vld [vmem:[%s2438_s8 + $0x8] sm:$0xff]  }
 0x3b3   : > { %v788_v15 = vpop.permute.xlu1 %787 }
 0x3b4   : > { %v793_v18 = vsel %vm677_vm3, %v788_v15, 0 }
 0x3b5   : > { %v1779_v9 = vpop.eup %1778 }
 0x3b6   : > { %v670_v11 = vmul.f32 %v1779_v9, %v1771_v57  ;;  %v1518_v57 = vld [vmem:[%s2435_s5] ss:$0 sm:$0xff]  ;;  %v1766_v9 = vld [vmem:[%s2440_s10 + $0x18] sm:$0xff]  }
 0x3b7   : > { %v902_v10 = vpop.xlane.xlu0 %901 }
 0x3b8   : > { %v671_v16 = vpack.c.bf16 %v670_v11, %v670_v11  ;;  %1782 = vrcp.f32 %v902_v10  ;;  %v1767_v10 = vld [vmem:[%s2440_s10 + $0x10] sm:$0xff]  }
 0x3bb   : > { %v673_v12 = vpop.permute.xlu0 %672 }
 0x3bc   : > { %v679_v13 = vsel %vm677_vm3, %v673_v12, 0 }
 0x3bd   : > { %1588 = vmatpush3.bf16.msra.mxu0 %v679_v13  ;;  %v1781_v17 = vpop.eup %1780 }
 0x3be   : > { %1599 = vmatprep.subr.bf16.mxu0 %v2001_v0  ;;  %v785_v14 = vmul.f32 %v1781_v17, %v1773_v60 }
 0x3bf   : > { %v1026_v25 = vpop.permute.xlu0 %1025 }
 0x3c0   : > { %1590 = vmatmul.mubr.msk.bf16.vlgmr.msra.gmra.mxu0 %vm613_vm2, %v671_v16  ;;  %v786_v19 = vpack.c.bf16 %v785_v14, %v785_v14  ;;  %v1031_v27 = vsel %vm677_vm3, %v1026_v25, 0  ;;  %v1522_v16 = vld [vmem:[#allocation8] ss:$0 sm:$0xff] }
 0x3c1   : > { %1600 = vmatpush3.bf16.msra.mxu0 %v793_v18  ;;  %1601 = vmatprep.mubr.msk.bf16.mxu0 %vm2002_vm0, %v2001_v0  ;;  %v1523_v18 = vld [vmem:[#allocation9] ss:$0 sm:$0xff] }
 0x3c2   : > { %1611 = vmatprep.subr.bf16.mxu0 %v2001_v0 }
 0x3c5   : > { %v1783_v20 = vpop.eup %1782 }
 0x3c6   : > { %v904_v22 = vmul.f32 %v1783_v20, %v1775_v62 }
 0x3c8   : > { %1602 = vmatmul.mubr.msk.bf16.vlgmr.msra.gmra.mxu0 %vm613_vm2, %v786_v19  ;;  %v905_v26 = vpack.c.bf16 %v904_v22, %v904_v22  ;;  %v1769_v22 = vld [vmem:[%s2440_s10] sm:$0xff]  }
 0x3c9   : > { %1613 = vmatprep.mubr.msk.bf16.mxu0 %vm2002_vm0, %v2001_v0 }
 0x3e4   : > { %v1021_v21 = vpop.xlane.xlu1 %1020 }
 0x3e5   : > { %1784 = vrcp.f32 %v1021_v21  ;;  %v1768_v21 = vld [vmem:[%s2440_s10 + $0x8] sm:$0xff]  }
 0x3e8   : > { %v907_v23 = vpop.permute.xlu1 %906 }
 0x3e9   : > { %v912_v24 = vsel %vm677_vm3, %v907_v23, 0  ;;  %v1524_v23 = vld [vmem:[#allocation11] ss:$0 sm:$0xff] }
 0x3ea   : > { %1612 = vmatpush3.bf16.msra.mxu0 %v912_v24 }
 0x3eb   : > { %1623 = vmatprep.subr.bf16.mxu0 %v2001_v0 }
 0x3ed   : > { %1614 = vmatmul.mubr.msk.bf16.vlgmr.msra.gmra.mxu0 %vm613_vm2, %v905_v26 }
 0x3ee   : > { %1624 = vmatpush3.bf16.msra.mxu0 %v1031_v27  ;;  %1625 = vmatprep.mubr.msk.bf16.mxu0 %vm2002_vm0, %v2001_v0 }
 0x3ef   : > { %1637 = vmatprep.subr.bf16.mxu0 %v2001_v0 }
 0x3f2   : > { %v1785_v28 = vpop.eup %1784 }
 0x3f3   : > { %v1023_v29 = vmul.f32 %v1785_v28, %v1777_v4 }
 0x3f5   : > { %v1024_v30 = vpack.c.bf16 %v1023_v29, %v1023_v29 }
 0x3f7   : > { %1626 = vmatmul.mubr.msk.bf16.vlgmr.msra.gmra.mxu0 %vm613_vm2, %v1024_v30 }
 0x3f8   : > { %1641 = vmatprep.mubr.msk.bf16.mxu0 %vm2002_vm0, %v2001_v0  ;;  %1638 = vmatpush3.bf16.msra.mxu0 %v1764_v8 }
 0x3f9   : > { %1639 = vmatprep.subr.bf16.mxu0 %v2001_v0 }
 0x480   : > { %v715_v31 = vpop.f32.mrf.mxu0 }
 0x481   : > { %v721_v32 = vpack.c.bf16 %v715_v31, %v715_v31  ;;  %v1528_v31 = vld [vmem:[%s2441_s11] ss:$0 sm:$0xff] }
 0x482   : > { %v1591_v33 = vpop.f32.mrf.mxu0 }
 0x483   : > { %723 = vst.msk [vmem:[#allocation2] sm:$0xf] %vm722_vm4, %v721_v32 }
 0x484   : > { %v718_v34 = vpop.f32.mrf.mxu0 }
 0x486   : > { %v1592_v35 = vpop.f32.mrf.mxu0 }
 0x488   : > { %v829_v36 = vpop.f32.mrf.mxu0 }
 0x489   : > { %v1540_v37 = vpack.c.bf16 %v829_v36, %v829_v36 }
 0x48a   : > { %v1603_v38 = vpop.f32.mrf.mxu0 }
 0x48b   : > { %839 = vrot.lane.b32.xlu1 %v1540_v37, %s2014_s20  ;;  %s532_s20 = scalar_lea.vmem [#allocation12], %s1497_s1  ;;  %s1928_s1 = scalar_lea.vmem %s1927_s19, 128 }
 0x48c   : > { %v832_v39 = vpop.f32.mrf.mxu0  ;;  %s1379_s14 = sshll.u32 %s532_s20, 4  ;;  %s1380_s14 = int_to_ptr.vmem [resolvable:$true] %s1379_s14 }
 0x48d   : > { %s1922_s21 = scalar_lea.vmem %s1380_s14, 64  ;;  %p1929_p9 = scmp.lt.s32.totalorder %s1380_s14, %s1927_s19 }
 0x48e   : > { %v1604_v40 = vpop.f32.mrf.mxu0  ;;  %p1923_p1 = scmp.ne.s32.totalorder %s1380_s14, %s1922_s21  ;;  %p1930_p11 = scmp.lt.s32.totalorder %s1928_s1, %s1922_s21 }
 0x490   : > { %p1924_p2 = pnand %p1923_p1, %p2482_p5  ;;  %p1931_p7 = por %p1930_p11, %p1929_p9 }
 0x492   : > { %p1925_p8 = pneg %p1924_p2 }
 0x494   : > { %p1932_p4 = pnand %p1931_p7, %p1925_p8 }
 0x4ad   : > { %v948_v42 = vpop.f32.mrf.mxu0 }
 0x4ae   : > { %v1541_v43 = vpack.c.bf16 %v948_v42, %v948_v42 }
 0x4af   : > { %v1615_v45 = vpop.f32.mrf.mxu0 }
 0x4b0   : > { %958 = vrot.lane.b32.xlu0 %v1541_v43, %s2015_s28  ;;  %s1377_s28 = scalar_lea.hbm %s2481_s17, %s1537_s9 }
 0x4b1   : > { %v951_v46 = vpop.f32.mrf.mxu0 }
 0x4b3   : > { %v1616_v47 = vpop.f32.mrf.mxu0 }
 0x4b4   : > { %v1534_v47 = vld [vmem:[%s2442_s12] ss:$0 sm:$0xff] }
 0x4b7   : > { %v1067_v48 = vpop.f32.mrf.mxu0 }
 0x4b8   : > { %v1542_v49 = vpack.c.bf16 %v1067_v48, %v1067_v48 }
 0x4b9   : > { %v1627_v50 = vpop.f32.mrf.mxu0 }
 0x4ba   : > { %1077 = vrot.lane.b32.xlu1 %v1542_v49, %s2016_s24  ;;  %v1535_v49 = vld [vmem:[%s2443_s13] ss:$0 sm:$0xff]  ;;  %s1366_s24 = scalar_lea.sflag [#allocation5], %s2242_s15 }
 0x4bb   : > { %v1070_v51 = vpop.f32.mrf.mxu0 }
 0x4bd   : > { %v1628_v52 = vpop.f32.mrf.mxu0 }
 0x4fd   : > { %v840_v53 = vpop.permute.xlu1 %839 }
 0x4fe   : > { %843 = vst.msk [vmem:[#allocation2] sm:$0xf] %vm842_vm5, %v840_v53 }
 0x522   : > { %v959_v54 = vpop.permute.xlu0 %958 }
 0x523   : > { %962 = vst.msk [vmem:[#allocation2] sm:$0xf] %vm961_vm6, %v959_v54 }
 0x52c   : > { %v1078_v55 = vpop.permute.xlu1 %1077 }
 0x52d   : > { %1081 = vst.msk [vmem:[#allocation2] sm:$0xf] %vm1080_vm7, %v1078_v55 }
 0x534   : > { %v1082_v56 = vld [vmem:[#allocation2] sm:$0xf] }
 0x535   : > { %1634 = vmatmul.mubr.msk.bf16.vlgmr.msra.gmra.mxu1 %vm563_vm1, %v1082_v56 }
 0x536   : > { %1653 = vmatprep.mubr.msk.bf16.mxu1 %vm2002_vm0, %v2001_v0  ;;  %1646 = vmatpush3.bf16.msra.mxu1 %v1766_v9 }
 0x537   : > { %1647 = vmatprep.subr.bf16.mxu1 %v2001_v0 }
 0x53a   : > { %1648 = vmatpush3.bf16.msra.mxu1 %v1767_v10 }
 0x53b   : > { %1649 = vmatprep.subr.bf16.mxu1 %v2001_v0 }
 0x53e   : > { %1650 = vmatpush3.bf16.msra.mxu1 %v1768_v21 }
 0x53f   : > { %1651 = vmatprep.subr.bf16.mxu1 %v2001_v0 }
 0x542   : > { %1652 = vmatpush3.bf16.msra.mxu1 %v1769_v22 }
 0x5f5   : > { %v1143_v58 = vpop.f32.mrf.mxu1 }
 0x5f6   : > { %v1144_v59 = vadd.f32 %v1518_v57, %v1143_v58 }
 0x5f7   : > { %v1635_v60 = vpop.f32.mrf.mxu1 }
 0x5f8   : > { %v1149_v61 = vadd.f32 %v1144_v59, %v2273_v7  ;;  %v1765_v7 = vld [vmem:[%s2438_s8] sm:$0xff]  }
 0x5f9   : > { %v1146_v62 = vpop.f32.mrf.mxu1  ;;  %1640 = vmatpush3.bf16.msra.mxu0 %v1765_v7 }
 0x5fa   : > { %v1150_v63 = vsel %vm563_vm1, %v1149_v61, 0.0 }
 0x5fb   : > { %1151 = vadd.xlane.f32.xlu0 %v1150_v63  ;;  %v1636_v1 = vpop.f32.mrf.mxu1 }
 0x684   : > { %v1152_v2 = vpop.xlane.xlu0 %1151 }
 0x685   : > { %v1154_v3 = vmul.f32 0.03125, %v1152_v2 }
 0x687   : > { %v1155_v4 = vsub.f32 %v1149_v61, %v1154_v3 }
 0x689   : > { %v1156_v5 = vmul.f32 %v1155_v4, %v1155_v4 }
 0x68b   : > { %v1157_v6 = vsel %vm563_vm1, %v1156_v5, 0.0 }
 0x68c   : > { %1158 = vadd.xlane.f32.xlu1 %v1157_v6 }
 0x715   : > { %v1159_v11 = vpop.xlane.xlu1 %1158 }
 0x716   : > { %v1160_v12 = vmul.f32 0.03125, %v1159_v11 }
 0x718   : > { %v1161_v13 = vadd.f32 1e-05, %v1160_v12 }
 0x71a   : > { %1786 = vrsqrt.f32 %v1161_v13 }
 0x727   : > { %v1787_v15 = vpop.eup %1786 }
 0x728   : > { %v1163_v17 = vmul.f32 %v1787_v15, %v1155_v4 }
 0x72a   : > { %v1171_v14 = vmul.f32 %v1522_v16, %v1163_v17 }
 0x72c   : > { %v1179_v19 = vadd.f32 %v1523_v18, %v1171_v14 }
 0x72e   : > { %v1180_v20 = vpack.c.bf16 %v1179_v19, %v1179_v19 }
 0x730   : > { %1642 = vmatmul.mubr.msk.bf16.vlgmr.msra.gmra.mxu0 %vm563_vm1, %v1180_v20 }
 0x7f0   : > { %v1241_v24 = vpop.f32.mrf.mxu0 }
 0x7f1   : > { %v1242_v25 = vadd.f32 %v1524_v23, %v1241_v24 }
 0x7f2   : > { %v1643_v26 = vpop.f32.mrf.mxu0 }
 0x7f3   : > { %v1247_v27 = vmax.f32 %v1242_v25, 0.0 }
 0x7f4   : > { %v1244_v28 = vpop.f32.mrf.mxu0 }
 0x7f5   : > { %v1248_v29 = vpack.c.bf16 %v1247_v27, %v1247_v27 }
 0x7f6   : > { %v1644_v30 = vpop.f32.mrf.mxu0 }
 0x7f7   : > { %1654 = vmatmul.mubr.msk.bf16.vlgmr.msra.gmra.mxu1 %vm1288_vm8, %v1248_v29 }
 0x8b7   : > { %v1326_v0 = vpop.f32.mrf.mxu1 }
 0x8b8   : > { %v1327_v32 = vadd.f32 %v1528_v31, %v1326_v0 }
 0x8b9   : > { %v1655_v33 = vpop.f32.mrf.mxu1 }
 0x8ba   : > { %v1332_v34 = vadd.f32 %v1327_v32, %v1179_v19 }
 0x8bb   : > { %v1329_v35 = vpop.f32.mrf.mxu1 }
 0x8bc   : > { %v1333_v36 = vsel %vm563_vm1, %v1332_v34, 0.0 }
 0x8bd   : > { %1334 = vadd.xlane.f32.xlu0 %v1333_v36  ;;  %v1656_v37 = vpop.f32.mrf.mxu1 }
 0x946   : > { %v1335_v38 = vpop.xlane.xlu0 %1334 }
 0x947   : > { %v1336_v39 = vmul.f32 0.03125, %v1335_v38 }
 0x949   : > { %v1337_v40 = vsub.f32 %v1332_v34, %v1336_v39 }
 0x94b   : > { %v1338_v41 = vmul.f32 %v1337_v40, %v1337_v40 }
 0x94d   : > { %v1339_v42 = vsel %vm563_vm1, %v1338_v41, 0.0 }
 0x94e   : > { %1340 = vadd.xlane.f32.xlu0 %v1339_v42 }
 0x9d7   : > { %v1341_v43 = vpop.xlane.xlu0 %1340 }
 0x9d8   : > { %v1342_v44 = vmul.f32 0.03125, %v1341_v43 }
 0x9da   : > { %v1343_v45 = vadd.f32 1e-05, %v1342_v44 }
 0x9dc   : > { %1788 = vrsqrt.f32 %v1343_v45 }
 0x9e9   : > { %v1789_v46 = vpop.eup %1788 }
 0x9ea   : > { %v1345_v48 = vmul.f32 %v1789_v46, %v1337_v40 }
 0x9ec   : > { %v1353_v50 = vmul.f32 %v1534_v47, %v1345_v48 }
 0x9ee   : > { %v1361_v51 = vadd.f32 %v1535_v49, %v1353_v50 }
 0x9f0   : > { %v1362_v52 = vpack.c.bf16 %v1361_v51, %v1361_v51 }
 0x9f2   : > { %1364 = vst.msk [vmem:[%s532_s20] sm:$0xf] %vm1363_vm9, %v1362_v52 }
 0x9f3   : > { %1935 = shalt.err (!%p1932_p4)
}
 0x9f4   : > { %s1936_s25 = scalar_lea.hbm %s1377_s28, 64  ;;  %s1940_s6 = scalar_lea.hbm %s2481_s17, 128 }
 0x9f5   : > { %p1937_p0 = scmp.ne.s32.totalorder %s1377_s28, %s1936_s25  ;;  %p1941_p10 = scmp.lt.s32.totalorder %s1377_s28, %s2481_s17 }
 0x9f6   : > { %p1942_p12 = scmp.lt.s32.totalorder %s1940_s6, %s1936_s25 }
 0x9f7   : > { %p1938_p6 = pnand %p1937_p0, %p2482_p5 }
 0x9f8   : > { %p1943_p13 = por %p1942_p12, %p1941_p10 }
 0x9f9   : > { %p1939_p3 = pneg %p1938_p6 }
 0x9fb   : > { %p1944_p1 = pnand %p1943_p13, %p1939_p3 }
 0x9fd   : > { %1947 = shalt.err (!%p1944_p1)
}
 0x9fe   : > { %1675 = dma.vmem_to_hbm [thread:$0]  (%p2482_p5), %s1380_s14, 64, %s1377_s28, %s1366_s24  }
 0x9ff PF: > { %s2483_s20 = sld [smem:[#allocation18_spill]]  ;;  %s1391_s27 = sand.u32 1, %s1982_s29  }
 0xa00   : > { %p2484_p2 = scmp.ne.s32.totalorder %s2473_s26, 0  ;;  %s1392_s18 = scalar_lea.sflag [#allocation5], %s1391_s27 }
 0xa05   : > { %p2485_p8 = scmp.ge.s32.totalorder %s2483_s20, 2 }
 0xa07   : > { %p1695_p9 = pnand %p2485_p8, %p2484_p2 }
 0xa09   : > { %p1696_p11 = pneg %p1695_p9 }
 0xa0b   : > { %1977 = dma.done.wait (%p1696_p11), %s1392_s18, 64  }
 0xa0c   : > { %1979 = vsyncadd (%p1696_p11), %s1392_s18, 4294967232  ;;  %s2486_s16 = sld [smem:[#allocation19_spill]]  ;;  %s2489_s29 = smov %s1986_s30 }
 0xa0d   : > { %s2487_s21 = sld [smem:[#allocation17_spill]] }
 0xa0e   : > { %s2488_s15 = sld [smem:[#allocation20_spill]] }
 0xa12   : > { %p29_p7 = scmp.ge.s32.totalorder %s2486_s16, 4  }
 0xa13   : > { %s2490_s30 = smov %s2487_s21 }
 0xa14   :  { %31 = sbr.rel (!%p29_p7) target bundleno = 13 (0xd), region = 137 }
 0xa19   :  { %1397 = vsyncpa [#allocation4], 1 }
 0xa1a   :  { %1399 = vsyncpa [#allocation4 + $0x1], 1 }
 0xa1b   :  { %1400 = vsyncpa [#allocation7], 1 }
 0xa1c   :  { %1401 = vsyncpa [#allocation10], 1 }
 0xa1d   :  { %1402 = vsyncpa [#allocation5], 1 }
 0xa1e   :  { %1404 = vsyncpa [#allocation5 + $0x1], 1 }

// kernel: tpu_custom_call.1
= control target key start
LH: loop header
LB: loop body
LE: loop exit
PB: predicated region body
PF: predicated region fallthrough
CT: control target
= control target key end

     0   :  { %s2430_s0 = inlined_call_operand.hbm [shape: bf16[2,8,32], index: 0, kind: input, shape index: {}]   ;;  %s2431_s1 = inlined_call_operand.hbm [shape: f32[8,32], index: 1, kind: input, shape index: {}]   ;;  %s2432_s2 = inlined_call_operand.vmem [shape: bf16[32,96], index: 2, kind: input, shape index: {}]   ;;  %s2433_s3 = inlined_call_operand.vmem [shape: f32[1,96], index: 3, kind: input, shape index: {}]   ;;  %s2434_s4 = inlined_call_operand.vmem [shape: bf16[32,32], index: 4, kind: input, shape index: {}]   ;;  %s2435_s5 = inlined_call_operand.vmem [shape: f32[1,32], index: 5, kind: input, shape index: {}]   ;;  %s2436_s6 = inlined_call_operand.hbm [shape: f32[1,32], index: 6, kind: input, shape index: {}]   ;;  %s2437_s7 = inlined_call_operand.hbm [shape: f32[1,32], index: 7, kind: input, shape index: {}]   ;;  %s2438_s8 = inlined_call_operand.vmem [shape: bf16[32,64], index: 8, kind: input, shape index: {}]   ;;  %s2439_s9 = inlined_call_operand.hbm [shape: f32[1,64], index: 9, kind: input, shape index: {}]   ;;  %s2440_s10 = inlined_call_operand.vmem [shape: bf16[64,32], index: 10, kind: input, shape index: {}]   ;;  %s2441_s11 = inlined_call_operand.vmem [shape: f32[1,32], index: 11, kind: input, shape index: {}]   ;;  %s2442_s12 = inlined_call_operand.vmem [shape: f32[1,32], index: 12, kind: input, shape index: {}]   ;;  %s2443_s13 = inlined_call_operand.vmem [shape: f32[1,32], index: 13, kind: input, shape index: {}]   ;;  %s2444_s14 = inlined_call_operand.hbm [shape: bf16[2,8,32], index: 14, kind: output, shape index: {}]  }
   0x1   :  { %2454 = sst [smem:[#allocation21_spill]] %s2431_s1 }
   0x2   :  { %2455 = sst [smem:[#allocation22_spill]] %s2436_s6 }
   0x3   :  { %2456 = sst [smem:[#allocation23_spill]] %s2437_s7 }
   0x4   :  { %2457 = sst [smem:[#allocation24_spill]] %s2439_s9 }
   0x5   :  { %2458 = sst [smem:[#allocation25_spill]] %s2444_s14 }
   0x6   :  { %19 = vsyncpa [#allocation4], 0 }
   0x7   :  { %21 = vsyncpa [#allocation4 + $0x1], 0 }
   0x8   :  { %22 = vsyncpa [#allocation7], 0 }
   0x9   :  { %23 = vsyncpa [#allocation10], 0 }
   0xa   :  { %24 = vsyncpa [#allocation5], 0 }
   0xb   :  { %26 = vsyncpa [#allocation5 + $0x1], 0  ;;  %s2093_s29 = smov 0   ;;  %s2095_s30 = smov 0  }
   0xc   :  { %s2097_s15 = smov 0   ;;  %s2099_s16 = smov 0  }
   0xd LB: > { %2459 = sst [smem:[#allocation17_spill]] %s1990_s15  ;;  %s1996_s17 = smov [#allocation6]   ;;  %s1994_s16 = sphi %s2099_s16, %s2486_s16   ;;  %s1990_s15 = sphi %s2097_s15, %s2488_s15   ;;  %s1986_s30 = sphi %s2095_s30, %s2490_s30   ;;  %s1982_s29 = sphi %s2093_s29, %s2489_s29  }
   0xe   : > { %2460 = sst [smem:[#allocation18_spill]] %s1994_s16  ;;  %s375_s18 = sshll.u32 %s1996_s17, 4  ;;  %s376_s18 = int_to_ptr.vmem [resolvable:$true] %s375_s18 }
   0xf   : > { %s2114_s19 = sadd.s32 4294967295, %s1994_s16   ;;  %p1488_p0 = scmp.ge.s32.totalorder %s1994_s16, 1 }
  0x10   : > { %p2445_p1 = scmp.eq.s32.totalorder %s2114_s19, 0  ;;  %p362_p2 = scmp.lt.s32.totalorder %s1994_s16, 3 }
  0x11   : > { %s1997_s21 = smov [#allocation9]   ;;  %s1998_s23 = smov [#allocation8]  }
  0x12   : > { %p2119_p3 = pnand %p1488_p0, %p362_p2  ;;  %s409_s22 = sshll.u32 %s1997_s21, 4  ;;  %s410_s22 = int_to_ptr.vmem [resolvable:$true] %s409_s22 }
  0x13   : > { %s398_s24 = sshll.u32 %s1998_s23, 4  ;;  %s1999_s26 = smov [#allocation11]   ;;  %s2132_s24 = int_to_ptr.vmem [resolvable:$true] %s398_s24 }
  0x14   : > { %s2461_s20 = scalar_select %p2119_p3, 1, 0 }
  0x15   : > { %p1677_p5 = pneg %p2119_p3  ;;  %s2134_s27 = sshll.u32 %s1999_s26, 4  ;;  %s424_s27 = int_to_ptr.vmem [resolvable:$true] %s2134_s27 }
  0x16   : > { %s1801_s28 = scalar_lea.vmem %s376_s18, 128  ;;  %p1809_p11 = scmp.lt.s32.totalorder %s376_s18, %s376_s18 }
  0x17   : > { %p2128_p6 = pnand %p1677_p5, %p2445_p1  ;;  %p1802_p8 = scmp.ne.s32.totalorder %s376_s18, %s1801_s28 }
  0x18   : > { %p1810_p12 = scmp.lt.s32.totalorder %s1801_s28, %s1801_s28 }
  0x19   : > { %p1792_p7 = pneg %p2128_p6 }
  0x1a   : > { %p1811_p13 = por %p1810_p12, %p1809_p11 }
  0x1b   : > { %p1804_p9 = pnand %p1802_p8, %p1792_p7 }
  0x1d   : > { %p1805_p10 = pneg %p1804_p9 }
  0x1f   : > { %p1812_p0 = pnand %p1811_p13, %p1805_p10 }
  0x21   : > { %1815 = shalt.err (!%p1812_p0)
}
  0x22   : > { %s2463_s1 = sld [smem:[#allocation21_spill]]  ;;  %s1827_s23 = scalar_lea.vmem %s410_s22, 16 }
  0x23   : > { %p1828_p2 = scmp.ne.s32.totalorder %s410_s22, %s1827_s23  ;;  %s1834_s26 = scalar_lea.vmem %s410_s22, 32 }
  0x24   : > { %p1835_p8 = scmp.lt.s32.totalorder %s410_s22, %s410_s22  ;;  %p1836_p9 = scmp.lt.s32.totalorder %s1834_s26, %s1827_s23 }
  0x25   : > { %p1830_p5 = pnand %p1828_p2, %p1792_p7 }
  0x26   : > { %p1837_p1 = por %p1836_p9, %p1835_p8 }
  0x27   : > { %p1831_p4 = pneg %p1830_p5 }
  0x28   : > { %1680 = dma.hbm_to_vmem [thread:$0]  (!%p2128_p6), %s2463_s1, 128, %s376_s18, [#allocation7]  }
  0x29   : > { %p1838_p11 = pnand %p1837_p1, %p1831_p4 }
  0x2b   : > { %1841 = shalt.err (!%p1838_p11)
}
  0x2c   : > { %s2464_s7 = sld [smem:[#allocation23_spill]]  ;;  %s1853_s18 = scalar_lea.vmem %s2132_s24, 16 }
  0x2d   : > { %p1854_p10 = scmp.ne.s32.totalorder %s2132_s24, %s1853_s18  ;;  %s1860_s17 = scalar_lea.vmem %s2132_s24, 32 }
  0x2e   : > { %p1861_p1 = scmp.lt.s32.totalorder %s2132_s24, %s2132_s24  ;;  %p1862_p4 = scmp.lt.s32.totalorder %s1860_s17, %s1853_s18 }
  0x2f   : > { %p1856_p12 = pnand %p1854_p10, %p1792_p7 }
  0x30   : > { %p1863_p0 = por %p1862_p4, %p1861_p1 }
  0x31   : > { %p1857_p13 = pneg %p1856_p12 }
  0x32   : > { %1686 = dma.hbm_to_vmem [thread:$0]  (!%p2128_p6), %s2464_s7, 16, %s410_s22, [#allocation10]  }
  0x33   : > { %p1864_p2 = pnand %p1863_p0, %p1857_p13 }
  0x35   : > { %1867 = shalt.err (!%p1864_p2)
}
  0x36   : > { %s2465_s6 = sld [smem:[#allocation22_spill]]  ;;  %s1879_s22 = scalar_lea.vmem %s424_s27, 16 }
  0x37   : > { %p1880_p5 = scmp.ne.s32.totalorder %s424_s27, %s1879_s22  ;;  %s1886_s23 = scalar_lea.vmem %s424_s27, 32 }
  0x38   : > { %p1887_p11 = scmp.lt.s32.totalorder %s424_s27, %s424_s27  ;;  %p1888_p10 = scmp.lt.s32.totalorder %s1886_s23, %s1879_s22 }
  0x39   : > { %p1882_p8 = pnand %p1880_p5, %p1792_p7 }
  0x3a   : > { %p1889_p12 = por %p1888_p10, %p1887_p11 }
  0x3b   : > { %p1883_p9 = pneg %p1882_p8 }
  0x3c   : > { %1683 = dma.hbm_to_vmem [thread:$0]  (!%p2128_p6), %s2465_s6, 16, %s2132_s24, [#allocation7]  }
  0x3d   : > { %p1890_p13 = pnand %p1889_p12, %p1883_p9 }
  0x3f   : > { %1893 = shalt.err (!%p1890_p13)
}
  0x40   : > { %s2466_s9 = sld [smem:[#allocation24_spill]]  ;;  %s1487_s24 = sadd.s32 4294967294, %s1994_s16  }
  0x41   : > { %s2179_s25 = sadd.s32 1, %s1994_s16   ;;  %s39_s17 = sadd.s32 1, %s1990_s15 }
  0x42   : > { %2467 = sst [smem:[#allocation19_spill]] %s2179_s25  ;;  %s36_s18 = ssub.s32 %s1994_s16, %s2179_s25 }
  0x43   : > { %p37_p7 = scmp.eq.s32.totalorder %s36_s18, 0  ;;  %p46_p1 = scmp.ne.s32.totalorder %s1990_s15, %s1986_s30 }
  0x44   : > { %p47_p4 = scmp.eq.s32.totalorder %s1994_s16, 0  ;;  %p52_p0 = scmp.ne.s32.totalorder %s1986_s30, %s1982_s29 }
  0x45   : > { %s2190_s14 = scalar_select %p37_p7, %s1990_s15, %s39_s17  }
  0x46   : > { %1689 = dma.hbm_to_vmem [thread:$0]  (!%p2128_p6), %s2466_s9, 16, %s424_s27, [#allocation10]  }
  0x47   : > { %2468 = sst [smem:[#allocation20_spill]] %s2190_s14  ;;  %p2192_p2 = por %p47_p4, %p46_p1 }
  0x48   : > { %p2470_p5 = scmp.eq.s32.totalorder %s2114_s19, 0  ;;  %p349_p8 = scmp.eq.s32.totalorder %s2114_s19, 1 }
  0x49   : > { %p355_p9 = scmp.eq.s32.totalorder %s1487_s24, 1  ;;  %p1702_p11 = scmp.lt.s32.totalorder %s1994_s16, 2 }
  0x4a   : > { %p2198_p6 = por %p2470_p5, %p52_p0  ;;  %s446_s22 = sand.u32 1, %s1990_s15  }
  0x4b   : > { %p2205_p10 = por %p349_p8, %p46_p1  ;;  %p2209_p12 = por %p355_p9, %p52_p0 }
  0x4c   : > { %s2471_s27 = scalar_select %p2198_p6, 1, 0 }
  0x4d   : > { %s2472_s23 = scalar_select %p2205_p10, 1, 0 }
  0x4e   : > { %s2473_s26 = scalar_select %p2209_p12, 1, 0 }
  0x4f   : > { %s1494_s28 = sshll.u32 %s446_s22, 2  ;;  %s1495_s18 = sshll.u32 %s1994_s16, 6 }
  0x50   : > { %s2217_s6 = scalar_lea.hbm %s2430_s0, %s1495_s18  ;;  %s450_s24 = scalar_lea.vmem [#allocation3], %s1494_s28 }
  0x51   : > { %s457_s7 = sshll.u32 %s450_s24, 4  ;;  %p2221_p13 = pnand %p1702_p11, %p2192_p2  ;;  %s458_s7 = int_to_ptr.vmem [resolvable:$true] %s457_s7 }
  0x52   : > { %s447_s14 = scalar_lea.sflag [#allocation4], %s446_s22  ;;  %s1894_s15 = scalar_lea.hbm %s2217_s6, 64 }
  0x53   : > { %p1895_p7 = scmp.ne.s32.totalorder %s2217_s6, %s1894_s15  ;;  %p1896_p1 = pneg %p2221_p13 }
  0x54   : > { %s1899_s17 = scalar_lea.hbm %s2430_s0, 128  ;;  %p1900_p5 = scmp.lt.s32.totalorder %s2217_s6, %s2430_s0 }
  0x55   : > { %p1897_p4 = pnand %p1896_p1, %p1895_p7  ;;  %p1901_p2 = scmp.lt.s32.totalorder %s1899_s17, %s1894_s15 }
  0x57   : > { %p1898_p0 = pneg %p1897_p4  ;;  %p1902_p8 = por %p1901_p2, %p1900_p5 }
  0x59   : > { %p1903_p9 = pnand %p1902_p8, %p1898_p0 }
  0x5b   : > { %1906 = shalt.err (!%p1903_p9)
}
  0x5c   : > { %s1907_s21 = scalar_lea.vmem %s458_s7, 64  ;;  %s2000_s22 = smov [#allocation3]  }
  0x5d   : > { %p1908_p11 = scmp.ne.s32.totalorder %s458_s7, %s1907_s21  ;;  %s1912_s25 = sshll.u32 %s2000_s22, 4  ;;  %s1913_s25 = int_to_ptr.vmem [resolvable:$false] %s1912_s25 }
  0x5e   : > { %s1914_s16 = scalar_lea.vmem %s1913_s25, 128  ;;  %p1915_p7 = scmp.lt.s32.totalorder %s458_s7, %s1913_s25 }
  0x5f   : > { %p1910_p12 = pnand %p1908_p11, %p1896_p1  ;;  %p1916_p4 = scmp.lt.s32.totalorder %s1914_s16, %s1907_s21 }
  0x61   : > { %p1911_p10 = pneg %p1910_p12  ;;  %p1917_p6 = por %p1916_p4, %p1915_p7 }
  0x63   : > { %p1918_p3 = pnand %p1917_p6, %p1911_p10 }
  0x65   : > { %1921 = shalt.err (!%p1918_p3)
}
  0x66   : > { %1693 = dma.hbm_to_vmem [thread:$0]  (!%p2221_p13), %s2217_s6, 64, %s458_s7, %s447_s14  }
  0x67   : > { %p2475_p0 = scmp.ne.s32.totalorder %s2461_s20, 0 }
  0x68   : > { %s2242_s15 = sand.u32 (!%p2475_p0), 1, %s1986_s30   ;;  %p2476_p6 = scmp.ne.s32.totalorder (!%p2475_p0), %s2471_s27, 0 }
  0x69   : > { %466 = sbr.rel (%p2475_p0) target bundleno = 2559 (0x9ff), region = 76  ;;  %s1497_s1 = sshll.u32 (!%p2475_p0), %s2242_s15, 2 }
  0x6a   : > { %s469_s25 = scalar_lea.sflag (!%p2475_p0), [#allocation4], %s2242_s15  ;;  %s472_s16 = scalar_lea.vmem (!%p2475_p0), [#allocation3], %s1497_s1 }
  0x6e   : > { %1965 = dma.done.wait (%p2476_p6), %s469_s25, 64  }
  0x6f   : > { %1967 = vsyncadd (%p2476_p6), %s469_s25, 4294967232  ;;  %p2477_p3 = scmp.eq.s32.totalorder %s2114_s19, 0 }
  0x71   : > { %1969 = dma.done.wait (%p2477_p3), [#allocation7], 144   ;;  %p2478_p10 = pmov %p2477_p3 }
  0x72   : > { %p2479_p12 = pmov %p2477_p3 }
  0x73   : > { %1971 = vsyncadd (%p2478_p10), [#allocation7], 4294967152 }
  0x74   : > { %1973 = dma.done.wait (%p2479_p12), [#allocation10], 32   ;;  %p2480_p13 = pmov %p2477_p3 }
  0x75   : > { %v2001_v0 = vmov 0.0   ;;  %vm2002_vm0 = vmmov 0   ;;  %v1760_v1 = vld [vmem:[%s2432_s2 + $0x8] sm:$0xff]   ;;  %v1761_v2 = vld [vmem:[%s2432_s2] sm:$0xff]   ;;  %vm563_vm1 = vcmask 261120   ;;  %s2003_s18 = smov 96  }
  0x76   : > { %1975 = vsyncadd (%p2480_p13), [#allocation10], 4294967264  ;;  %1573 = vmatprep.subr.bf16.mxu0 %v2001_v0  ;;  %1577 = vmatprep.mubr.msk.bf16.mxu0 %vm2002_vm0, %v2001_v0  ;;  %v534_v3 = vld [vmem:[%s472_s16] sm:$0xf]  ;;  %v537_v4 = vld [vmem:[#allocation6] sm:$0xff]  ;;  %s2004_s17 = smov 120  }
  0x77   : > { %1581 = vmatprep.subr.bf16.mxu1 %v2001_v0  ;;  %1583 = vmatprep.mubr.msk.bf16.mxu1 %vm2002_vm0, %v2001_v0  ;;  %v535_v5 = vunpack.c.l.bf16 %v534_v3  ;;  %v1503_v9 = vld [vmem:[%s2433_s3] ss:$0 sm:$0xff]  ;;  %s2005_s28 = smov 88   ;;  %s2006_s24 = smov 80   ;;  %vm613_vm2 = vcmask 64512   ;;  %vm677_vm3 = vcmask 1043456  }
  0x78   : > { %1574 = vmatpush3.bf16.msra.mxu0 %v1760_v1  ;;  %s2007_s21 = smov 112   ;;  %s2008_s22 = smov 72   ;;  %vm722_vm4 = vcmask 60416   ;;  %vm842_vm5 = vcmask 126016   ;;  %vm961_vm6 = vcmask 191616   ;;  %vm1080_vm7 = vcmask 257216  }
  0x79   : > { %1575 = vmatprep.subr.bf16.mxu0 %v2001_v0  ;;  %v536_v6 = vmul.f32 5.656854, %v535_v5  ;;  %s2009_s25 = smov 104   ;;  %s2010_s16 = smov 56   ;;  %vm1288_vm8 = vcmask 523264   ;;  %vm1363_vm9 = vcmask 257024  }
  0x7a   : > { %s2011_s6 = smov 64   ;;  %s2012_s7 = smov 40  }
  0x7b   : > { %v2273_v7 = vadd.f32 %v537_v4, %v536_v6  ;;  %s2013_s9 = smov 48   ;;  %s2014_s20 = smov 8  }
  0x7c   : > { %1576 = vmatpush3.bf16.msra.mxu0 %v1761_v2  ;;  %p2482_p5 = scmp.ne.s32.totalorder %s2472_s23, 0 }
  0x7d   : > { %1587 = vmatprep.subr.bf16.mxu0 %v2001_v0  ;;  %v539_v8 = vpack.c.bf16 %v2273_v7, %v2273_v7 }
  0x7f   : > { %1578 = vmatmul.mubr.msk.bf16.vlgmr.msra.gmra.mxu0 %vm563_vm1, %v539_v8 }
  0x80   : > { %1589 = vmatprep.mubr.msk.bf16.mxu0 %vm2002_vm0, %v2001_v0 }
 0x13f   : > { %v601_v10 = vpop.f32.mrf.mxu0 }
 0x140   : > { %v602_v11 = vadd.f32 %v1503_v9, %v601_v10 }
 0x141   : > { %v1579_v12 = vpop.f32.mrf.mxu0 }
 0x142   : > { %v607_v13 = vmul.f32 0.35355338, %v602_v11  ;;  %v2284_v14 = vpack.c.bf16 %v602_v11, %v602_v11 }
 0x143   : > { %v604_v15 = vpop.f32.mrf.mxu0 }
 0x144   : > { %v608_v16 = vpack.c.bf16 %v607_v13, %v607_v13  ;;  %611 = vrot.lane.b32.xlu0 %v2284_v14, %s2003_s18 }
 0x145   : > { %v1580_v17 = vpop.f32.mrf.mxu0 }
 0x146   : > { %725 = vrot.lane.b32.xlu1 %v608_v16, %s2004_s17  ;;  %s2481_s17 = sld [smem:[#allocation25_spill]] }
 0x148   : > { %727 = vrot.lane.b32.xlu0 %v2284_v14, %s2005_s28  ;;  %s2015_s28 = smov 16  }
 0x14a   : > { %846 = vrot.lane.b32.xlu1 %v2284_v14, %s2006_s24  ;;  %s2016_s24 = smov 24  }
 0x14c   : > { %844 = vrot.lane.b32.xlu0 %v608_v16, %s2007_s21 }
 0x14e   : > { %965 = vrot.lane.b32.xlu1 %v2284_v14, %s2008_s22  ;;  %s2017_s22 = smov [#allocation12]  }
 0x150   : > { %963 = vrot.lane.b32.xlu0 %v608_v16, %s2009_s25 }
 0x1b6   : > { %v612_v18 = vpop.permute.xlu0 %611 }
 0x1b7   : > { %v618_v19 = vsel %vm613_vm2, %v612_v18, 0 }
 0x1b8   : > { %1582 = vmatpush3.bf16.xpose.msra.mxu1 %v618_v19  ;;  %v726_v21 = vpop.permute.xlu1 %725 }
 0x1b9   : > { %1593 = vmatprep.subr.bf16.mxu1 %v2001_v0 }
 0x1ba   : > { %v728_v20 = vpop.permute.xlu0 %727 }
 0x1bb   : > { %v733_v22 = vsel %vm613_vm2, %v728_v20, 0 }
 0x1bc   : > { %v847_v23 = vpop.permute.xlu1 %846 }
 0x1bd   : > { %v852_v24 = vsel %vm613_vm2, %v847_v23, 0 }
 0x1be   : > { %v845_v26 = vpop.permute.xlu0 %844 }
 0x1bf   : > { %1584 = vmatmul.mubr.msk.bf16.vlgmr.msra.gmra.mxu1 %vm613_vm2, %v608_v16 }
 0x1c0   : > { %1594 = vmatpush3.bf16.xpose.msra.mxu1 %v733_v22  ;;  %1595 = vmatprep.mubr.msk.bf16.mxu1 %vm2002_vm0, %v2001_v0  ;;  %v966_v25 = vpop.permute.xlu1 %965 }
 0x1c1   : > { %1605 = vmatprep.subr.bf16.mxu1 %v2001_v0  ;;  %v971_v27 = vsel %vm613_vm2, %v966_v25, 0 }
 0x1c2   : > { %v964_v28 = vpop.permute.xlu0 %963 }
 0x1c7   : > { %1596 = vmatmul.mubr.msk.bf16.vlgmr.msra.gmra.mxu1 %vm613_vm2, %v726_v21 }
 0x1c8   : > { %1606 = vmatpush3.bf16.xpose.msra.mxu1 %v852_v24  ;;  %1607 = vmatprep.mubr.msk.bf16.mxu1 %vm2002_vm0, %v2001_v0 }
 0x1c9   : > { %1617 = vmatprep.subr.bf16.mxu1 %v2001_v0 }
 0x1cf   : > { %1608 = vmatmul.mubr.msk.bf16.vlgmr.msra.gmra.mxu1 %vm613_vm2, %v845_v26 }
 0x1d0   : > { %1618 = vmatpush3.bf16.xpose.msra.mxu1 %v971_v27  ;;  %1619 = vmatprep.mubr.msk.bf16.mxu1 %vm2002_vm0, %v2001_v0 }
 0x1d1   : > { %1629 = vmatprep.subr.bf16.mxu1 %v2001_v0 }
 0x1d7   : > { %1620 = vmatmul.mubr.msk.bf16.vlgmr.msra.gmra.mxu1 %vm613_vm2, %v964_v28 }
 0x1d8   : > { %1633 = vmatprep.mubr.msk.bf16.mxu1 %vm2002_vm0, %v2001_v0 }
 0x27f   : > { %v654_v29 = vpop.f32.mrf.mxu1 }
 0x280   : > { %v660_v30 = vsel %vm613_vm2, %v654_v29, -inf }
 0x281   : > { %661 = vmax.xlane.f32.xlu1 %v660_v30  ;;  %v1585_v31 = vpop.f32.mrf.mxu1 }
 0x283   : > { %v657_v32 = vpop.f32.mrf.mxu1 }
 0x285   : > { %v1586_v33 = vpop.f32.mrf.mxu1 }
 0x287   : > { %v769_v34 = vpop.f32.mrf.mxu1 }
 0x288   : > { %v775_v35 = vsel %vm613_vm2, %v769_v34, -inf }
 0x289   : > { %776 = vmax.xlane.f32.xlu0 %v775_v35  ;;  %v1597_v36 = vpop.f32.mrf.mxu1 }
 0x28b   : > { %v772_v37 = vpop.f32.mrf.mxu1 }
 0x28d   : > { %v1598_v38 = vpop.f32.mrf.mxu1 }
 0x28f   : > { %v888_v39 = vpop.f32.mrf.mxu1 }
 0x290   : > { %v894_v40 = vsel %vm613_vm2, %v888_v39, -inf }
 0x291   : > { %895 = vmax.xlane.f32.xlu0 %v894_v40  ;;  %v1609_v41 = vpop.f32.mrf.mxu1 }
 0x292   : > { %v1762_v41 = vld [vmem:[%s2434_s4 + $0x8] sm:$0xff]  }
 0x293   : > { %v891_v42 = vpop.f32.mrf.mxu1  ;;  %1630 = vmatpush3.bf16.msra.mxu1 %v1762_v41 }
 0x294   : > { %1631 = vmatprep.subr.bf16.mxu1 %v2001_v0 }
 0x295   : > { %v1610_v43 = vpop.f32.mrf.mxu1 }
 0x297   : > { %v1007_v44 = vpop.f32.mrf.mxu1 }
 0x298   : > { %v1013_v45 = vsel %vm613_vm2, %v1007_v44, -inf }
 0x299   : > { %1014 = vmax.xlane.f32.xlu1 %v1013_v45  ;;  %v1621_v46 = vpop.f32.mrf.mxu1 }
 0x29b   : > { %v1010_v47 = vpop.f32.mrf.mxu1 }
 0x29d   : > { %v1622_v48 = vpop.f32.mrf.mxu1 }
 0x30a   : > { %v662_v49 = vpop.xlane.xlu1 %661 }
 0x30b   : > { %v663_v50 = vsub.f32 %v654_v29, %v662_v49 }
 0x30d   : > { %v664_v51 = vmul.f32 1.442695, %v663_v50 }
 0x30f   : > { %1770 = vpow2.f32 %v664_v51 }
 0x312   : > { %v777_v52 = vpop.xlane.xlu0 %776 }
 0x313   : > { %v778_v53 = vsub.f32 %v769_v34, %v777_v52 }
 0x315   : > { %v779_v54 = vmul.f32 1.442695, %v778_v53 }
 0x317   : > { %1772 = vpow2.f32 %v779_v54 }
 0x31a   : > { %v896_v55 = vpop.xlane.xlu0 %895 }
 0x31b   : > { %v897_v56 = vsub.f32 %v888_v39, %v896_v55 }
 0x31c   : > { %v1771_v57 = vpop.eup %1770 }
 0x31d   : > { %v898_v58 = vmul.f32 1.442695, %v897_v56  ;;  %v666_v59 = vsel %vm613_vm2, %v1771_v57, 0.0 }
 0x31e   : > { %667 = vadd.xlane.f32.xlu0 %v666_v59 }
 0x31f   : > { %1774 = vpow2.f32 %v898_v58 }
 0x322   : > { %v1015_v1 = vpop.xlane.xlu1 %1014 }
 0x323   : > { %v1016_v2 = vsub.f32 %v1007_v44, %v1015_v1  ;;  %v1763_v44 = vld [vmem:[%s2434_s4] sm:$0xff]  }
 0x324   : > { %v1773_v60 = vpop.eup %1772  ;;  %1632 = vmatpush3.bf16.msra.mxu1 %v1763_v44 }
 0x325   : > { %v781_v61 = vsel %vm613_vm2, %v1773_v60, 0.0  ;;  %v1017_v3 = vmul.f32 1.442695, %v1016_v2  ;;  %1645 = vmatprep.subr.bf16.mxu1 %v2001_v0 }
 0x326   : > { %782 = vadd.xlane.f32.xlu1 %v781_v61 }
 0x327   : > { %1776 = vpow2.f32 %v1017_v3 }
 0x32c   : > { %v1775_v62 = vpop.eup %1774 }
 0x32d   : > { %v900_v63 = vsel %vm613_vm2, %v1775_v62, 0.0 }
 0x32e   : > { %901 = vadd.xlane.f32.xlu0 %v900_v63 }
 0x334   : > { %v1777_v4 = vpop.eup %1776 }
 0x335   : > { %v1019_v5 = vsel %vm613_vm2, %v1777_v4, 0.0 }
 0x337   : > { %787 = vrot.lane.b32.xlu1 %v2284_v14, %s2010_s16 }
 0x344   : > { %672 = vrot.lane.b32.xlu0 %v2284_v14, %s2011_s6 }
 0x348   : > { %1025 = vrot.lane.b32.xlu0 %v2284_v14, %s2012_s7 }
 0x35b   : > { %1020 = vadd.xlane.f32.xlu1 %v1019_v5 }
 0x36c   : > { %906 = vrot.lane.b32.xlu1 %v2284_v14, %s2013_s9  ;;  %s1537_s9 = sshll.u32 %s2114_s19, 6  ;;  %s1926_s19 = sshll.u32 %s2017_s22, 4  ;;  %s1927_s19 = int_to_ptr.vmem [resolvable:$false] %s1926_s19 }
 0x3a7   : > { %v668_v6 = vpop.xlane.xlu0 %667 }
 0x3a8   : > { %1778 = vrcp.f32 %v668_v6 }
 0x3af   : > { %v783_v8 = vpop.xlane.xlu1 %782 }
 0x3b0   : > { %1780 = vrcp.f32 %v783_v8  ;;  %v1764_v8 = vld [vmem:[%s2438_s8 + $0x8] sm:$0xff]  }
 0x3b3   : > { %v788_v15 = vpop.permute.xlu1 %787 }
 0x3b4   : > { %v793_v18 = vsel %vm677_vm3, %v788_v15, 0 }
 0x3b5   : > { %v1779_v9 = vpop.eup %1778 }
 0x3b6   : > { %v670_v11 = vmul.f32 %v1779_v9, %v1771_v57  ;;  %v1518_v57 = vld [vmem:[%s2435_s5] ss:$0 sm:$0xff]  ;;  %v1766_v9 = vld [vmem:[%s2440_s10 + $0x18] sm:$0xff]  }
 0x3b7   : > { %v902_v10 = vpop.xlane.xlu0 %901 }
 0x3b8   : > { %v671_v16 = vpack.c.bf16 %v670_v11, %v670_v11  ;;  %1782 = vrcp.f32 %v902_v10  ;;  %v1767_v10 = vld [vmem:[%s2440_s10 + $0x10] sm:$0xff]  }
 0x3bb   : > { %v673_v12 = vpop.permute.xlu0 %672 }
 0x3bc   : > { %v679_v13 = vsel %vm677_vm3, %v673_v12, 0 }
 0x3bd   : > { %1588 = vmatpush3.bf16.msra.mxu0 %v679_v13  ;;  %v1781_v17 = vpop.eup %1780 }
 0x3be   : > { %1599 = vmatprep.subr.bf16.mxu0 %v2001_v0  ;;  %v785_v14 = vmul.f32 %v1781_v17, %v1773_v60 }
 0x3bf   : > { %v1026_v25 = vpop.permute.xlu0 %1025 }
 0x3c0   : > { %1590 = vmatmul.mubr.msk.bf16.vlgmr.msra.gmra.mxu0 %vm613_vm2, %v671_v16  ;;  %v786_v19 = vpack.c.bf16 %v785_v14, %v785_v14  ;;  %v1031_v27 = vsel %vm677_vm3, %v1026_v25, 0  ;;  %v1522_v16 = vld [vmem:[#allocation8] ss:$0 sm:$0xff] }
 0x3c1   : > { %1600 = vmatpush3.bf16.msra.mxu0 %v793_v18  ;;  %1601 = vmatprep.mubr.msk.bf16.mxu0 %vm2002_vm0, %v2001_v0  ;;  %v1523_v18 = vld [vmem:[#allocation9] ss:$0 sm:$0xff] }
 0x3c2   : > { %1611 = vmatprep.subr.bf16.mxu0 %v2001_v0 }
 0x3c5   : > { %v1783_v20 = vpop.eup %1782 }
 0x3c6   : > { %v904_v22 = vmul.f32 %v1783_v20, %v1775_v62 }
 0x3c8   : > { %1602 = vmatmul.mubr.msk.bf16.vlgmr.msra.gmra.mxu0 %vm613_vm2, %v786_v19  ;;  %v905_v26 = vpack.c.bf16 %v904_v22, %v904_v22  ;;  %v1769_v22 = vld [vmem:[%s2440_s10] sm:$0xff]  }
 0x3c9   : > { %1613 = vmatprep.mubr.msk.bf16.mxu0 %vm2002_vm0, %v2001_v0 }
 0x3e4   : > { %v1021_v21 = vpop.xlane.xlu1 %1020 }
 0x3e5   : > { %1784 = vrcp.f32 %v1021_v21  ;;  %v1768_v21 = vld [vmem:[%s2440_s10 + $0x8] sm:$0xff]  }
 0x3e8   : > { %v907_v23 = vpop.permute.xlu1 %906 }
 0x3e9   : > { %v912_v24 = vsel %vm677_vm3, %v907_v23, 0  ;;  %v1524_v23 = vld [vmem:[#allocation11] ss:$0 sm:$0xff] }
 0x3ea   : > { %1612 = vmatpush3.bf16.msra.mxu0 %v912_v24 }
 0x3eb   : > { %1623 = vmatprep.subr.bf16.mxu0 %v2001_v0 }
 0x3ed   : > { %1614 = vmatmul.mubr.msk.bf16.vlgmr.msra.gmra.mxu0 %vm613_vm2, %v905_v26 }
 0x3ee   : > { %1624 = vmatpush3.bf16.msra.mxu0 %v1031_v27  ;;  %1625 = vmatprep.mubr.msk.bf16.mxu0 %vm2002_vm0, %v2001_v0 }
 0x3ef   : > { %1637 = vmatprep.subr.bf16.mxu0 %v2001_v0 }
 0x3f2   : > { %v1785_v28 = vpop.eup %1784 }
 0x3f3   : > { %v1023_v29 = vmul.f32 %v1785_v28, %v1777_v4 }
 0x3f5   : > { %v1024_v30 = vpack.c.bf16 %v1023_v29, %v1023_v29 }
 0x3f7   : > { %1626 = vmatmul.mubr.msk.bf16.vlgmr.msra.gmra.mxu0 %vm613_vm2, %v1024_v30 }
 0x3f8   : > { %1641 = vmatprep.mubr.msk.bf16.mxu0 %vm2002_vm0, %v2001_v0  ;;  %1638 = vmatpush3.bf16.msra.mxu0 %v1764_v8 }
 0x3f9   : > { %1639 = vmatprep.subr.bf16.mxu0 %v2001_v0 }
 0x480   : > { %v715_v31 = vpop.f32.mrf.mxu0 }
 0x481   : > { %v721_v32 = vpack.c.bf16 %v715_v31, %v715_v31  ;;  %v1528_v31 = vld [vmem:[%s2441_s11] ss:$0 sm:$0xff] }
 0x482   : > { %v1591_v33 = vpop.f32.mrf.mxu0 }
 0x483   : > { %723 = vst.msk [vmem:[#allocation2] sm:$0xf] %vm722_vm4, %v721_v32 }
 0x484   : > { %v718_v34 = vpop.f32.mrf.mxu0 }
 0x486   : > { %v1592_v35 = vpop.f32.mrf.mxu0 }
 0x488   : > { %v829_v36 = vpop.f32.mrf.mxu0 }
 0x489   : > { %v1540_v37 = vpack.c.bf16 %v829_v36, %v829_v36 }
 0x48a   : > { %v1603_v38 = vpop.f32.mrf.mxu0 }
 0x48b   : > { %839 = vrot.lane.b32.xlu1 %v1540_v37, %s2014_s20  ;;  %s532_s20 = scalar_lea.vmem [#allocation12], %s1497_s1  ;;  %s1928_s1 = scalar_lea.vmem %s1927_s19, 128 }
 0x48c   : > { %v832_v39 = vpop.f32.mrf.mxu0  ;;  %s1379_s14 = sshll.u32 %s532_s20, 4  ;;  %s1380_s14 = int_to_ptr.vmem [resolvable:$true] %s1379_s14 }
 0x48d   : > { %s1922_s21 = scalar_lea.vmem %s1380_s14, 64  ;;  %p1929_p9 = scmp.lt.s32.totalorder %s1380_s14, %s1927_s19 }
 0x48e   : > { %v1604_v40 = vpop.f32.mrf.mxu0  ;;  %p1923_p1 = scmp.ne.s32.totalorder %s1380_s14, %s1922_s21  ;;  %p1930_p11 = scmp.lt.s32.totalorder %s1928_s1, %s1922_s21 }
 0x490   : > { %p1924_p2 = pnand %p1923_p1, %p2482_p5  ;;  %p1931_p7 = por %p1930_p11, %p1929_p9 }
 0x492   : > { %p1925_p8 = pneg %p1924_p2 }
 0x494   : > { %p1932_p4 = pnand %p1931_p7, %p1925_p8 }
 0x4ad   : > { %v948_v42 = vpop.f32.mrf.mxu0 }
 0x4ae   : > { %v1541_v43 = vpack.c.bf16 %v948_v42, %v948_v42 }
 0x4af   : > { %v1615_v45 = vpop.f32.mrf.mxu0 }
 0x4b0   : > { %958 = vrot.lane.b32.xlu0 %v1541_v43, %s2015_s28  ;;  %s1377_s28 = scalar_lea.hbm %s2481_s17, %s1537_s9 }
 0x4b1   : > { %v951_v46 = vpop.f32.mrf.mxu0 }
 0x4b3   : > { %v1616_v47 = vpop.f32.mrf.mxu0 }
 0x4b4   : > { %v1534_v47 = vld [vmem:[%s2442_s12] ss:$0 sm:$0xff] }
 0x4b7   : > { %v1067_v48 = vpop.f32.mrf.mxu0 }
 0x4b8   : > { %v1542_v49 = vpack.c.bf16 %v1067_v48, %v1067_v48 }
 0x4b9   : > { %v1627_v50 = vpop.f32.mrf.mxu0 }
 0x4ba   : > { %1077 = vrot.lane.b32.xlu1 %v1542_v49, %s2016_s24  ;;  %v1535_v49 = vld [vmem:[%s2443_s13] ss:$0 sm:$0xff]  ;;  %s1366_s24 = scalar_lea.sflag [#allocation5], %s2242_s15 }
 0x4bb   : > { %v1070_v51 = vpop.f32.mrf.mxu0 }
 0x4bd   : > { %v1628_v52 = vpop.f32.mrf.mxu0 }
 0x4fd   : > { %v840_v53 = vpop.permute.xlu1 %839 }
 0x4fe   : > { %843 = vst.msk [vmem:[#allocation2] sm:$0xf] %vm842_vm5, %v840_v53 }
 0x522   : > { %v959_v54 = vpop.permute.xlu0 %958 }
 0x523   : > { %962 = vst.msk [vmem:[#allocation2] sm:$0xf] %vm961_vm6, %v959_v54 }
 0x52c   : > { %v1078_v55 = vpop.permute.xlu1 %1077 }
 0x52d   : > { %1081 = vst.msk [vmem:[#allocation2] sm:$0xf] %vm1080_vm7, %v1078_v55 }
 0x534   : > { %v1082_v56 = vld [vmem:[#allocation2] sm:$0xf] }
 0x535   : > { %1634 = vmatmul.mubr.msk.bf16.vlgmr.msra.gmra.mxu1 %vm563_vm1, %v1082_v56 }
 0x536   : > { %1653 = vmatprep.mubr.msk.bf16.mxu1 %vm2002_vm0, %v2001_v0  ;;  %1646 = vmatpush3.bf16.msra.mxu1 %v1766_v9 }
 0x537   : > { %1647 = vmatprep.subr.bf16.mxu1 %v2001_v0 }
 0x53a   : > { %1648 = vmatpush3.bf16.msra.mxu1 %v1767_v10 }
 0x53b   : > { %1649 = vmatprep.subr.bf16.mxu1 %v2001_v0 }
 0x53e   : > { %1650 = vmatpush3.bf16.msra.mxu1 %v1768_v21 }
 0x53f   : > { %1651 = vmatprep.subr.bf16.mxu1 %v2001_v0 }
 0x542   : > { %1652 = vmatpush3.bf16.msra.mxu1 %v1769_v22 }
 0x5f5   : > { %v1143_v58 = vpop.f32.mrf.mxu1 }
 0x5f6   : > { %v1144_v59 = vadd.f32 %v1518_v57, %v1143_v58 }
 0x5f7   : > { %v1635_v60 = vpop.f32.mrf.mxu1 }
 0x5f8   : > { %v1149_v61 = vadd.f32 %v1144_v59, %v2273_v7  ;;  %v1765_v7 = vld [vmem:[%s2438_s8] sm:$0xff]  }
 0x5f9   : > { %v1146_v62 = vpop.f32.mrf.mxu1  ;;  %1640 = vmatpush3.bf16.msra.mxu0 %v1765_v7 }
 0x5fa   : > { %v1150_v63 = vsel %vm563_vm1, %v1149_v61, 0.0 }
 0x5fb   : > { %1151 = vadd.xlane.f32.xlu0 %v1150_v63  ;;  %v1636_v1 = vpop.f32.mrf.mxu1 }
 0x684   : > { %v1152_v2 = vpop.xlane.xlu0 %1151 }
 0x685   : > { %v1154_v3 = vmul.f32 0.03125, %v1152_v2 }
 0x687   : > { %v1155_v4 = vsub.f32 %v1149_v61, %v1154_v3 }
 0x689   : > { %v1156_v5 = vmul.f32 %v1155_v4, %v1155_v4 }
 0x68b   : > { %v1157_v6 = vsel %vm563_vm1, %v1156_v5, 0.0 }
 0x68c   : > { %1158 = vadd.xlane.f32.xlu1 %v1157_v6 }
 0x715   : > { %v1159_v11 = vpop.xlane.xlu1 %1158 }
 0x716   : > { %v1160_v12 = vmul.f32 0.03125, %v1159_v11 }
 0x718   : > { %v1161_v13 = vadd.f32 1e-05, %v1160_v12 }
 0x71a   : > { %1786 = vrsqrt.f32 %v1161_v13 }
 0x727   : > { %v1787_v15 = vpop.eup %1786 }
 0x728   : > { %v1163_v17 = vmul.f32 %v1787_v15, %v1155_v4 }
 0x72a   : > { %v1171_v14 = vmul.f32 %v1522_v16, %v1163_v17 }
 0x72c   : > { %v1179_v19 = vadd.f32 %v1523_v18, %v1171_v14 }
 0x72e   : > { %v1180_v20 = vpack.c.bf16 %v1179_v19, %v1179_v19 }
 0x730   : > { %1642 = vmatmul.mubr.msk.bf16.vlgmr.msra.gmra.mxu0 %vm563_vm1, %v1180_v20 }
 0x7f0   : > { %v1241_v24 = vpop.f32.mrf.mxu0 }
 0x7f1   : > { %v1242_v25 = vadd.f32 %v1524_v23, %v1241_v24 }
 0x7f2   : > { %v1643_v26 = vpop.f32.mrf.mxu0 }
 0x7f3   : > { %v1247_v27 = vmax.f32 %v1242_v25, 0.0 }
 0x7f4   : > { %v1244_v28 = vpop.f32.mrf.mxu0 }
 0x7f5   : > { %v1248_v29 = vpack.c.bf16 %v1247_v27, %v1247_v27 }
 0x7f6   : > { %v1644_v30 = vpop.f32.mrf.mxu0 }
 0x7f7   : > { %1654 = vmatmul.mubr.msk.bf16.vlgmr.msra.gmra.mxu1 %vm1288_vm8, %v1248_v29 }
 0x8b7   : > { %v1326_v0 = vpop.f32.mrf.mxu1 }
 0x8b8   : > { %v1327_v32 = vadd.f32 %v1528_v31, %v1326_v0 }
 0x8b9   : > { %v1655_v33 = vpop.f32.mrf.mxu1 }
 0x8ba   : > { %v1332_v34 = vadd.f32 %v1327_v32, %v1179_v19 }
 0x8bb   : > { %v1329_v35 = vpop.f32.mrf.mxu1 }
 0x8bc   : > { %v1333_v36 = vsel %vm563_vm1, %v1332_v34, 0.0 }
 0x8bd   : > { %1334 = vadd.xlane.f32.xlu0 %v1333_v36  ;;  %v1656_v37 = vpop.f32.mrf.mxu1 }
 0x946   : > { %v1335_v38 = vpop.xlane.xlu0 %1334 }
 0x947   : > { %v1336_v39 = vmul.f32 0.03125, %v1335_v38 }
 0x949   : > { %v1337_v40 = vsub.f32 %v1332_v34, %v1336_v39 }
 0x94b   : > { %v1338_v41 = vmul.f32 %v1337_v40, %v1337_v40 }
 0x94d   : > { %v1339_v42 = vsel %vm563_vm1, %v1338_v41, 0.0 }
 0x94e   : > { %1340 = vadd.xlane.f32.xlu0 %v1339_v42 }
 0x9d7   : > { %v1341_v43 = vpop.xlane.xlu0 %1340 }
 0x9d8   : > { %v1342_v44 = vmul.f32 0.03125, %v1341_v43 }
 0x9da   : > { %v1343_v45 = vadd.f32 1e-05, %v1342_v44 }
 0x9dc   : > { %1788 = vrsqrt.f32 %v1343_v45 }
 0x9e9   : > { %v1789_v46 = vpop.eup %1788 }
 0x9ea   : > { %v1345_v48 = vmul.f32 %v1789_v46, %v1337_v40 }
 0x9ec   : > { %v1353_v50 = vmul.f32 %v1534_v47, %v1345_v48 }
 0x9ee   : > { %v1361_v51 = vadd.f32 %v1535_v49, %v1353_v50 }
 0x9f0   : > { %v1362_v52 = vpack.c.bf16 %v1361_v51, %v1361_v51 }
 0x9f2   : > { %1364 = vst.msk [vmem:[%s532_s20] sm:$0xf] %vm1363_vm9, %v1362_v52 }
 0x9f3   : > { %1935 = shalt.err (!%p1932_p4)
}
 0x9f4   : > { %s1936_s25 = scalar_lea.hbm %s1377_s28, 64  ;;  %s1940_s6 = scalar_lea.hbm %s2481_s17, 128 }
 0x9f5   : > { %p1937_p0 = scmp.ne.s32.totalorder %s1377_s28, %s1936_s25  ;;  %p1941_p10 = scmp.lt.s32.totalorder %s1377_s28, %s2481_s17 }
 0x9f6   : > { %p1942_p12 = scmp.lt.s32.totalorder %s1940_s6, %s1936_s25 }
 0x9f7   : > { %p1938_p6 = pnand %p1937_p0, %p2482_p5 }
 0x9f8   : > { %p1943_p13 = por %p1942_p12, %p1941_p10 }
 0x9f9   : > { %p1939_p3 = pneg %p1938_p6 }
 0x9fb   : > { %p1944_p1 = pnand %p1943_p13, %p1939_p3 }
 0x9fd   : > { %1947 = shalt.err (!%p1944_p1)
}
 0x9fe   : > { %1675 = dma.vmem_to_hbm [thread:$0]  (%p2482_p5), %s1380_s14, 64, %s1377_s28, %s1366_s24  }
 0x9ff PF: > { %s2483_s20 = sld [smem:[#allocation18_spill]]  ;;  %s1391_s27 = sand.u32 1, %s1982_s29  }
 0xa00   : > { %p2484_p2 = scmp.ne.s32.totalorder %s2473_s26, 0  ;;  %s1392_s18 = scalar_lea.sflag [#allocation5], %s1391_s27 }
 0xa05   : > { %p2485_p8 = scmp.ge.s32.totalorder %s2483_s20, 2 }
 0xa07   : > { %p1695_p9 = pnand %p2485_p8, %p2484_p2 }
 0xa09   : > { %p1696_p11 = pneg %p1695_p9 }
 0xa0b   : > { %1977 = dma.done.wait (%p1696_p11), %s1392_s18, 64  }
 0xa0c   : > { %1979 = vsyncadd (%p1696_p11), %s1392_s18, 4294967232  ;;  %s2486_s16 = sld [smem:[#allocation19_spill]]  ;;  %s2489_s29 = smov %s1986_s30 }
 0xa0d   : > { %s2487_s21 = sld [smem:[#allocation17_spill]] }
 0xa0e   : > { %s2488_s15 = sld [smem:[#allocation20_spill]] }
 0xa12   : > { %p29_p7 = scmp.ge.s32.totalorder %s2486_s16, 4  }
 0xa13   : > { %s2490_s30 = smov %s2487_s21 }
 0xa14   :  { %31 = sbr.rel (!%p29_p7) target bundleno = 13 (0xd), region = 137 }
 0xa19   :  { %1397 = vsyncpa [#allocation4], 1 }
 0xa1a   :  { %1399 = vsyncpa [#allocation4 + $0x1], 1 }
 0xa1b   :  { %1400 = vsyncpa [#allocation7], 1 }
 0xa1c   :  { %1401 = vsyncpa [#allocation10], 1 }
 0xa1d   :  { %1402 = vsyncpa [#allocation5], 1 }
 0xa1e   :  { %1404 = vsyncpa [#allocation5 + $0x1], 1 }

</bundles_post_ra>
